<compile_context>
chip_gen: v7x
topology: tpu7x:2x2x1
jax: 0.10.0
libtpu: 0.0.40
codegen_flags: <defaults>
</compile_context>

<pallas_src>
import math
import jax
import jax.numpy as jnp
from jax.experimental import pallas as pl
from jax.experimental.pallas import tpu as pltpu


LANE = 128   # TPU lane width; all feature/hidden dims padded/packed to this


def _round_up(n, m):
    return ((n + m - 1) // m) * m


# ----------------------------------------------------------------------------
# Single fused Pallas kernel: slow + fast + full chains in one launch
# ----------------------------------------------------------------------------
def _make_fastslow_kernel(L, nmid, Dp, HW, bf16_matmul):
    """L coupling layers total (slow blocks, fast blocks, full block), each with
    (nmid + 2) Linear layers per sub-net, scale/translate fused per layer:
        layer 0 : (Dp, HW)     scale -> cols [0,H), translate -> [HALF,HALF+H)
        hidden  : (HW, HW)     block-diag(scale, translate)
        last    : (HW, 2*Dp)   log_s -> cols [0,Dp), t -> cols [Dp,2Dp)
    All padded / identity lanes carry zero weights and mask=1 so they
    contribute exactly 0 to log_s, t and the log-det.
    """
    HALF = HW // 2
    slice_act = (HALF % LANE == 0)   # split at a vreg lane boundary -> layout-free

    def dot(a, w):
        if bf16_matmul:               # weights pre-cast at build time (v6e/v7x opt-in)
            a = a.astype(jnp.bfloat16)
        return jnp.dot(a, w, preferred_element_type=jnp.float32)

    def body(x_ref, mask_ref, w0_ref, b0_ref, wm_ref, bm_ref, wl_ref, bl_ref,
             y_ref, ld_ref):
        x = x_ref[...]                 # (TB, Dp) f32, resident for the whole chain
        masks = mask_ref[...]          # (L, Dp)
        tb = x.shape[0]

        if slice_act:
            # tanh only on the scale half, relu only on the translate half;
            # both cuts are at a 128-lane boundary -> no select, half the EUP work.
            def act(h):
                return jnp.concatenate(
                    [jnp.tanh(h[:, :HALF]), jnp.maximum(h[:, HALF:], 0.0)],
                    axis=-1)
        else:
            # packed hidden (H <= 64): single 128-lane tile, select with a
            # hoisted lane mask (tanh traffic already halved by the packing).
            sel = jax.lax.broadcasted_iota(jnp.int32, (tb, HW), 1) < HALF
            def act(h):
                return jnp.where(sel, jnp.tanh(h), jnp.maximum(h, 0.0))

        ld = jnp.zeros((tb, Dp), jnp.float32)   # per-lane log-det accumulator (VPU adds)

        for l in range(L):                       # statically unrolled chain
            m = masks[l:l + 1, :]                # (1, Dp)
            om = 1.0 - m
            h = act(dot(x * m, w0_ref[l]) + b0_ref[l])          # (TB, HW)
            for j in range(nmid):
                h = act(dot(h, wm_ref[l * nmid + j]) + bm_ref[l * nmid + j])
            h = dot(h, wl_ref[l]) + bl_ref[l]                    # (TB, 2*Dp)
            log_s = h[:, :Dp] * om
            t = h[:, Dp:] * om
            x = x * jnp.exp(log_s) + t
            ld = ld + log_s                      # no per-layer XLU reduce

        y_ref[...] = x                           # lane-dense (TB, 128)
        ld_ref[...] = ld                         # lane-dense slab; summed outside

    if nmid > 0:
        return body

    def body_nomid(x_ref, mask_ref, w0_ref, b0_ref, wl_ref, bl_ref, y_ref, ld_ref):
        body(x_ref, mask_ref, w0_ref, b0_ref, None, None, wl_ref, bl_ref,
             y_ref, ld_ref)

    return body_nomid


def _const_spec(a):
    """Full-array block, constant index_map -> DMA'd once, resident across tiles."""
    # TODO(synk): pipeline_mode=pl.Buffered(1) would single-buffer these resident
    # weights (halves their VMEM footprint for num_hidden>=512 on v7x/v5e); left
    # out here to keep lowering portable across jax versions.
    nd = a.ndim
    return pl.BlockSpec(a.shape, lambda i, _n=nd: (0,) * _n)


def fastslow_forward_pallas(x, fused, *, tile_b=None):
    """FastSlow.forward(mode='direct', cond_inputs=None) -> (outputs, logdets)."""
    B = x.shape[0]
    D, Dp, HW, L, nmid = fused["D"], fused["Dp"], fused["HW"], fused["L"], fused["nmid"]

    if tile_b is None:
        if B <= 256:
            tile_b = max(8, _round_up(B, 8))   # single tile, only sublane padding
        else:
            tile_b = 128   # >=2 tiles (v7x megacore), v5e-friendly working set
            # TODO(synk): bump to 256 on v6e/v7x for very large batches.
    pb = _round_up(B, tile_b)

    # One zero-padded staging buffer for the whole forward (slow|fast packed in lanes).
    xp = jnp.zeros((pb, Dp), jnp.float32).at[:B, :D].set(x)

    const_args = [fused["masks"], fused["w0"], fused["b0"]]
    if nmid > 0:
        const_args += [fused["wm"], fused["bm"]]
    const_args += [fused["wl"], fused["bl"]]

    kernel = _make_fastslow_kernel(L, nmid, Dp, HW, fused["bf16"])

    # Raise the scoped-VMEM limit only when the resident (double-buffered)
    # weights actually need it (v5e default 16 MiB, v7x 32 MiB of 64 MiB).
    weight_bytes = sum(int(a.size) * a.dtype.itemsize for a in const_args)
    io_bytes = 3 * tile_b * Dp * 4
    vmem_need = 2 * (weight_bytes + io_bytes) + (2 << 20)
    cp = {"dimension_semantics": ("parallel",)}   # shard batch tiles across TCs (v7x)
    if vmem_need > (16 << 20):
        cp["vmem_limit_bytes"] = int(min(vmem_need, 64 << 20))

    y_pad, ld_pad = pl.pallas_call(
        kernel,
        grid=(pb // tile_b,),
        in_specs=[pl.BlockSpec((tile_b, Dp), lambda i: (i, 0))]      # x: batch tiled
                 + [_const_spec(a) for a in const_args],             # weights resident
        out_specs=(
            pl.BlockSpec((tile_b, Dp), lambda i: (i, 0)),            # y (lane-dense)
            pl.BlockSpec((tile_b, Dp), lambda i: (i, 0)),            # logdet slab
        ),
        out_shape=(
            jax.ShapeDtypeStruct((pb, Dp), jnp.float32),
            jax.ShapeDtypeStruct((pb, Dp), jnp.float32),
        ),
        compiler_params=pltpu.CompilerParams(**cp),
    )(xp, *const_args)

    out = y_pad[:B, :D]
    # per-lane log-dets of all three chains sum to logdets_slow+logdets_fast+logdets
    logdets = jnp.sum(ld_pad[:B], axis=-1, keepdims=True)
    return out, logdets


# ----------------------------------------------------------------------------
# Parameter construction (deterministic, synthetic) and fusion/packing
# ----------------------------------------------------------------------------
def _init_linear(key, n_in, n_out):
    # TODO(synk): PyTorch source defines (but never applies) orthogonal_ init;
    # scaled-normal weights / zero bias are used for this synthetic benchmark.
    w = jax.random.normal(key, (n_in, n_out), dtype=jnp.float32) / math.sqrt(n_in)
    b = jnp.zeros((1, n_out), dtype=jnp.float32)
    return w, b


def _init_coupling_params(key, num_inputs, num_hidden, num_layers):
    dims = [(num_inputs, num_hidden)] + [(num_hidden, num_hidden)] * num_layers \
           + [(num_hidden, num_inputs)]
    keys = jax.random.split(key, 2 * len(dims))
    s_params = [_init_linear(keys[i], *dims[i]) for i in range(len(dims))]
    t_params = [_init_linear(keys[len(dims) + i], *dims[i]) for i in range(len(dims))]
    return s_params, t_params


def build_fastslow_params(key, num_slow, num_fast, num_hidden, num_blocks, num_layers):
    raw = {"slow": [], "fast": [], "full": []}
    mask_slow = (jnp.arange(num_slow) % 2).astype(jnp.float32)
    mask_fast = (jnp.arange(num_fast) % 2).astype(jnp.float32)
    mask_full = jnp.concatenate(
        [jnp.ones((num_slow,), jnp.float32), jnp.zeros((num_fast,), jnp.float32)])

    keys = jax.random.split(key, 2 * num_blocks + 1)
    ki = 0
    for _ in range(num_blocks):
        s_p, t_p = _init_coupling_params(keys[ki], num_slow, num_hidden, num_layers)
        raw["slow"].append((mask_slow, s_p, t_p))
        mask_slow = 1.0 - mask_slow
        ki += 1
    for _ in range(num_blocks):
        s_p, t_p = _init_coupling_params(keys[ki], num_fast, num_hidden, num_layers)
        raw["fast"].append((mask_fast, s_p, t_p))
        mask_fast = 1.0 - mask_fast
        ki += 1
    s_p, t_p = _init_coupling_params(keys[ki], num_slow + num_fast, num_hidden, num_layers)
    raw["full"].append((mask_full, s_p, t_p))
    return raw


def build_fused_fastslow(raw, num_slow, num_fast, num_hidden, *, use_bf16_matmul=False):
    """Fuse all three chains into one stacked, lane-packed weight set.

    Feature slab: slow -> lanes [0,num_slow), fast -> [num_slow,num_slow+num_fast),
    padded to 128. Hidden: scale block in lanes [0,H), translate in [HALF,HALF+H)
    with HALF=64 when H<=64 (one 128-lane tile) else HALF=round_up(H,128).
    Identity lanes of each layer get mask=1 and zero output weights/bias.
    """
    D = num_slow + num_fast
    Dp = _round_up(D, LANE)
    H = num_hidden
    HALF = 64 if H <= 64 else _round_up(H, LANE)
    HW = 2 * HALF

    flat = [(0, num_slow) + lyr for lyr in raw["slow"]] \
         + [(num_slow, num_fast) + lyr for lyr in raw["fast"]] \
         + [(0, D) + lyr for lyr in raw["full"]]

    L = len(flat)
    nmid = len(flat[0][3]) - 2

    masks, w0s, b0s, wms, bms, wls, bls = [], [], [], [], [], [], []
    for off, d, mask, s_p, t_p in flat:
        assert len(s_p) == len(t_p) == nmid + 2
        # identity lanes: mask=1 -> (1-mask)=0 -> log_s=t=0 -> lane untouched
        masks.append(jnp.ones((Dp,), jnp.float32).at[off:off + d].set(mask.reshape(-1)))

        ws0, bs0 = s_p[0]
        wt0, bt0 = t_p[0]
        w0 = jnp.zeros((Dp, HW), jnp.float32)
        w0 = w0.at[off:off + d, :H].set(ws0).at[off:off + d, HALF:HALF + H].set(wt0)
        b0 = jnp.zeros((1, HW), jnp.float32)
        b0 = b0.at[:, :H].set(bs0.reshape(1, H)).at[:, HALF:HALF + H].set(bt0.reshape(1, H))
        w0s.append(w0)
        b0s.append(b0)

        for j in range(1, nmid + 1):
            wsj, bsj = s_p[j]
            wtj, btj = t_p[j]
            wm = jnp.zeros((HW, HW), jnp.float32)
            wm = wm.at[:H, :H].set(wsj).at[HALF:HALF + H, HALF:HALF + H].set(wtj)
            bm = jnp.zeros((1, HW), jnp.float32)
            bm = bm.at[:, :H].set(bsj.reshape(1, H)).at[:, HALF:HALF + H].set(btj.reshape(1, H))
            wms.append(wm)
            bms.append(bm)

        wsl, bsl = s_p[-1]
        wtl, btl = t_p[-1]
        wl = jnp.zeros((HW, 2 * Dp), jnp.float32)
        wl = wl.at[:H, off:off + d].set(wsl).at[HALF:HALF + H, Dp + off:Dp + off + d].set(wtl)
        bl = jnp.zeros((1, 2 * Dp), jnp.float32)
        bl = bl.at[:, off:off + d].set(bsl.reshape(1, d)) \
               .at[:, Dp + off:Dp + off + d].set(btl.reshape(1, d))
        wls.append(wl)
        bls.append(bl)

    wdt = jnp.bfloat16 if use_bf16_matmul else jnp.float32   # pre-cast ONCE at build
    fused = dict(
        D=D, Dp=Dp, HW=HW, L=L, nmid=nmid, bf16=use_bf16_matmul,
        masks=jnp.stack(masks),              # (L, Dp)
        w0=jnp.stack(w0s).astype(wdt),       # (L, Dp, HW)
        b0=jnp.stack(b0s),                   # (L, 1, HW)
        wl=jnp.stack(wls).astype(wdt),       # (L, HW, 2Dp)
        bl=jnp.stack(bls),                   # (L, 1, 2Dp)
    )
    if nmid > 0:                             # no dummy DMA'd arrays when num_layers==0
        fused["wm"] = jnp.stack(wms).astype(wdt)   # (L*nmid, HW, HW)
        fused["bm"] = jnp.stack(bms)               # (L*nmid, 1, HW)
    return fused


# ----------------------------------------------------------------------------
# Pure-JAX reference (for correctness check)
# ----------------------------------------------------------------------------
def _coupling_ref(x, mask, s_params, t_params):
    mask = mask.reshape(1, -1)
    mx = x * mask

    def mlp(h, params, act):
        for i, (w, b) in enumerate(params):
            h = h @ w + b
            if i < len(params) - 1:
                h = act(h)
        return h

    log_s = mlp(mx, s_params, jnp.tanh) * (1.0 - mask)
    t = mlp(mx, t_params, lambda v: jnp.maximum(v, 0.0)) * (1.0 - mask)
    return x * jnp.exp(log_s) + t, jnp.sum(log_s, axis=-1, keepdims=True)


def _chain_ref(x, layers):
    logdet = jnp.zeros((x.shape[0], 1), jnp.float32)
    for mask, s_p, t_p in layers:
        x, ld = _coupling_ref(x, mask, s_p, t_p)
        logdet = logdet + ld
    return x, logdet


def fastslow_forward_ref(x, raw, num_slow, num_fast):
    slow, ld_s = _chain_ref(x[:, :num_slow], raw["slow"])
    fast, ld_f = _chain_ref(x[:, num_slow:num_slow + num_fast], raw["fast"])
    xcat = jnp.concatenate([slow, fast], axis=1)
    out, ld = _chain_ref(xcat, raw["full"])
    return out, ld_s + ld_f + ld


# ----------------------------------------------------------------------------
if __name__ == "__main__":
    num_slow, num_fast = 4, 4
    num_hidden = 32
    num_blocks = 2
    num_layers = 2
    batch = 2

    key = jax.random.PRNGKey(0)
    k_params, k_x = jax.random.split(key)
    raw = build_fastslow_params(k_params, num_slow, num_fast, num_hidden,
                                num_blocks, num_layers)
    fused = build_fused_fastslow(raw, num_slow, num_fast, num_hidden)
    x = jax.random.normal(k_x, (batch, num_slow + num_fast), dtype=jnp.float32)

    out, logdets = fastslow_forward_pallas(x, fused)
    out = jax.block_until_ready(out)
    logdets = jax.block_until_ready(logdets)

    # sanity check against pure-JAX reference (f32 everywhere)
    out_ref, ld_ref = fastslow_forward_ref(x, raw, num_slow, num_fast)
    assert out.shape == (batch, num_slow + num_fast)
    assert logdets.shape == (batch, 1)
    assert jnp.allclose(out, out_ref, atol=1e-4, rtol=1e-4), "output mismatch"
    assert jnp.allclose(logdets, ld_ref, atol=1e-4, rtol=1e-4), "logdet mismatch"

    print("KERNEL_OK")
</pallas_src>

<mosaic_0001>
module attributes {stable_mosaic.version = 11 : i64} {
  func.func @body(%arg0: i32, %arg1: memref<8x128xf32, #tpu.memory_space<vmem>>, %arg2: memref<5x128xf32, #tpu.memory_space<vmem>>, %arg3: memref<5x128x128xf32, #tpu.memory_space<vmem>>, %arg4: memref<5x1x128xf32, #tpu.memory_space<vmem>>, %arg5: memref<10x128x128xf32, #tpu.memory_space<vmem>>, %arg6: memref<10x1x128xf32, #tpu.memory_space<vmem>>, %arg7: memref<5x128x256xf32, #tpu.memory_space<vmem>>, %arg8: memref<5x1x256xf32, #tpu.memory_space<vmem>>, %arg9: memref<8x128xf32, #tpu.memory_space<vmem>>, %arg10: memref<8x128xf32, #tpu.memory_space<vmem>>) attributes {dimension_semantics = [#tpu.dimension_semantics<parallel>], iteration_bounds = array<i64: 1>, scalar_prefetch = 0 : i64, scratch_operands = 0 : i64, tpu.core_type = #tpu.core_type<tc>, window_params = [{transform_indices = @transform_0, window_bounds = array<i64: 8, 128>}, {pipeline_mode = #tpu.pipeline_mode<synchronous>, transform_indices = @transform_1, window_bounds = array<i64: 5, 128>}, {pipeline_mode = #tpu.pipeline_mode<synchronous>, transform_indices = @transform_2, window_bounds = array<i64: 5, 128, 128>}, {pipeline_mode = #tpu.pipeline_mode<synchronous>, transform_indices = @transform_3, window_bounds = array<i64: 5, 1, 128>}, {pipeline_mode = #tpu.pipeline_mode<synchronous>, transform_indices = @transform_4, window_bounds = array<i64: 10, 128, 128>}, {pipeline_mode = #tpu.pipeline_mode<synchronous>, transform_indices = @transform_5, window_bounds = array<i64: 10, 1, 128>}, {pipeline_mode = #tpu.pipeline_mode<synchronous>, transform_indices = @transform_6, window_bounds = array<i64: 5, 128, 256>}, {pipeline_mode = #tpu.pipeline_mode<synchronous>, transform_indices = @transform_7, window_bounds = array<i64: 5, 1, 256>}, {transform_indices = @transform_8, window_bounds = array<i64: 8, 128>}, {transform_indices = @transform_9, window_bounds = array<i64: 8, 128>}]} {
    %c0 = arith.constant 0 : index
    %c0_0 = arith.constant 0 : index
    %0 = vector.load %arg1[%c0, %c0_0] : memref<8x128xf32, #tpu.memory_space<vmem>>, vector<8x128xf32>
    %c0_1 = arith.constant 0 : index
    %c0_2 = arith.constant 0 : index
    %1 = vector.load %arg2[%c0_1, %c0_2] : memref<5x128xf32, #tpu.memory_space<vmem>>, vector<5x128xf32>
    %2 = tpu.iota {dimensions = array<i32: 1>} : vector<8x128xi32>
    %c64_i32 = arith.constant 64 : i32
    %3 = vector.broadcast %c64_i32 : i32 to vector<8x128xi32>
    %4 = arith.cmpi slt, %2, %3 : vector<8x128xi32>
    %cst = arith.constant 0.000000e+00 : f32
    %5 = vector.broadcast %cst : f32 to vector<8x128xf32>
    %6 = vector.extract_strided_slice %1 {offsets = [0, 0], sizes = [1, 128], strides = [1, 1]} : vector<5x128xf32> to vector<1x128xf32>
    %cst_3 = arith.constant 1.000000e+00 : f32
    %7 = vector.broadcast %cst_3 : f32 to vector<1x128xf32>
    %8 = arith.subf %7, %6 : vector<1x128xf32>
    %9 = vector.broadcast %6 : vector<1x128xf32> to vector<8x128xf32>
    %10 = arith.mulf %0, %9 : vector<8x128xf32>
    %c0_4 = arith.constant 0 : index
    %c0_5 = arith.constant 0 : index
    %c0_6 = arith.constant 0 : index
    %11 = vector.load %arg3[%c0_4, %c0_5, %c0_6] : memref<5x128x128xf32, #tpu.memory_space<vmem>>, vector<1x128x128xf32>
    %12 = vector.shape_cast %11 : vector<1x128x128xf32> to vector<128x128xf32>
    %cst_7 = arith.constant dense<0.000000e+00> : vector<8x128xf32>
    %13 = tpu.matmul %10, %12, %cst_7 {dimension_numbers = #tpu.dot_dimension_numbers<[1], [0], [0], [1], [0, 0, 1, 1], [], []>} : vector<8x128xf32>, vector<128x128xf32>, vector<8x128xf32> -> vector<8x128xf32>
    %c0_8 = arith.constant 0 : index
    %c0_9 = arith.constant 0 : index
    %c0_10 = arith.constant 0 : index
    %14 = vector.load %arg4[%c0_8, %c0_9, %c0_10] : memref<5x1x128xf32, #tpu.memory_space<vmem>>, vector<1x1x128xf32>
    %15 = vector.shape_cast %14 : vector<1x1x128xf32> to vector<1x128xf32>
    %16 = vector.broadcast %15 : vector<1x128xf32> to vector<8x128xf32>
    %17 = arith.addf %13, %16 : vector<8x128xf32>
    %18 = math.tanh %17 : vector<8x128xf32>
    %cst_11 = arith.constant 0.000000e+00 : f32
    %19 = vector.broadcast %cst_11 : f32 to vector<8x128xf32>
    %20 = arith.maximumf %17, %19 : vector<8x128xf32>
    %21 = arith.select %4, %18, %20 : vector<8x128xi1>, vector<8x128xf32>
    %c0_12 = arith.constant 0 : index
    %c0_13 = arith.constant 0 : index
    %c0_14 = arith.constant 0 : index
    %22 = vector.load %arg5[%c0_12, %c0_13, %c0_14] : memref<10x128x128xf32, #tpu.memory_space<vmem>>, vector<1x128x128xf32>
    %23 = vector.shape_cast %22 : vector<1x128x128xf32> to vector<128x128xf32>
    %cst_15 = arith.constant dense<0.000000e+00> : vector<8x128xf32>
    %24 = tpu.matmul %21, %23, %cst_15 {dimension_numbers = #tpu.dot_dimension_numbers<[1], [0], [0], [1], [0, 0, 1, 1], [], []>} : vector<8x128xf32>, vector<128x128xf32>, vector<8x128xf32> -> vector<8x128xf32>
    %c0_16 = arith.constant 0 : index
    %c0_17 = arith.constant 0 : index
    %c0_18 = arith.constant 0 : index
    %25 = vector.load %arg6[%c0_16, %c0_17, %c0_18] : memref<10x1x128xf32, #tpu.memory_space<vmem>>, vector<1x1x128xf32>
    %26 = vector.shape_cast %25 : vector<1x1x128xf32> to vector<1x128xf32>
    %27 = vector.broadcast %26 : vector<1x128xf32> to vector<8x128xf32>
    %28 = arith.addf %24, %27 : vector<8x128xf32>
    %29 = math.tanh %28 : vector<8x128xf32>
    %cst_19 = arith.constant 0.000000e+00 : f32
    %30 = vector.broadcast %cst_19 : f32 to vector<8x128xf32>
    %31 = arith.maximumf %28, %30 : vector<8x128xf32>
    %32 = arith.select %4, %29, %31 : vector<8x128xi1>, vector<8x128xf32>
    %c1 = arith.constant 1 : index
    %c0_20 = arith.constant 0 : index
    %c0_21 = arith.constant 0 : index
    %33 = vector.load %arg5[%c1, %c0_20, %c0_21] : memref<10x128x128xf32, #tpu.memory_space<vmem>>, vector<1x128x128xf32>
    %34 = vector.shape_cast %33 : vector<1x128x128xf32> to vector<128x128xf32>
    %cst_22 = arith.constant dense<0.000000e+00> : vector<8x128xf32>
    %35 = tpu.matmul %32, %34, %cst_22 {dimension_numbers = #tpu.dot_dimension_numbers<[1], [0], [0], [1], [0, 0, 1, 1], [], []>} : vector<8x128xf32>, vector<128x128xf32>, vector<8x128xf32> -> vector<8x128xf32>
    %c1_23 = arith.constant 1 : index
    %c0_24 = arith.constant 0 : index
    %c0_25 = arith.constant 0 : index
    %36 = vector.load %arg6[%c1_23, %c0_24, %c0_25] : memref<10x1x128xf32, #tpu.memory_space<vmem>>, vector<1x1x128xf32>
    %37 = vector.shape_cast %36 : vector<1x1x128xf32> to vector<1x128xf32>
    %38 = vector.broadcast %37 : vector<1x128xf32> to vector<8x128xf32>
    %39 = arith.addf %35, %38 : vector<8x128xf32>
    %40 = math.tanh %39 : vector<8x128xf32>
    %cst_26 = arith.constant 0.000000e+00 : f32
    %41 = vector.broadcast %cst_26 : f32 to vector<8x128xf32>
    %42 = arith.maximumf %39, %41 : vector<8x128xf32>
    %43 = arith.select %4, %40, %42 : vector<8x128xi1>, vector<8x128xf32>
    %c0_27 = arith.constant 0 : index
    %c0_28 = arith.constant 0 : index
    %c0_29 = arith.constant 0 : index
    %44 = vector.load %arg7[%c0_27, %c0_28, %c0_29] : memref<5x128x256xf32, #tpu.memory_space<vmem>>, vector<1x128x256xf32>
    %45 = vector.shape_cast %44 : vector<1x128x256xf32> to vector<128x256xf32>
    %cst_30 = arith.constant dense<0.000000e+00> : vector<8x256xf32>
    %46 = tpu.matmul %43, %45, %cst_30 {dimension_numbers = #tpu.dot_dimension_numbers<[1], [0], [0], [1], [0, 0, 1, 1], [], []>} : vector<8x128xf32>, vector<128x256xf32>, vector<8x256xf32> -> vector<8x256xf32>
    %c0_31 = arith.constant 0 : index
    %c0_32 = arith.constant 0 : index
    %c0_33 = arith.constant 0 : index
    %47 = vector.load %arg8[%c0_31, %c0_32, %c0_33] : memref<5x1x256xf32, #tpu.memory_space<vmem>>, vector<1x1x256xf32>
    %48 = vector.shape_cast %47 : vector<1x1x256xf32> to vector<1x256xf32>
    %49 = vector.broadcast %48 : vector<1x256xf32> to vector<8x256xf32>
    %50 = arith.addf %46, %49 : vector<8x256xf32>
    %51 = vector.extract_strided_slice %50 {offsets = [0, 0], sizes = [8, 128], strides = [1, 1]} : vector<8x256xf32> to vector<8x128xf32>
    %52 = vector.broadcast %8 : vector<1x128xf32> to vector<8x128xf32>
    %53 = arith.mulf %51, %52 : vector<8x128xf32>
    %54 = vector.extract_strided_slice %50 {offsets = [0, 128], sizes = [8, 128], strides = [1, 1]} : vector<8x256xf32> to vector<8x128xf32>
    %55 = vector.broadcast %8 : vector<1x128xf32> to vector<8x128xf32>
    %56 = arith.mulf %54, %55 : vector<8x128xf32>
    %57 = math.exp %53 : vector<8x128xf32>
    %58 = arith.mulf %0, %57 : vector<8x128xf32>
    %59 = arith.addf %58, %56 : vector<8x128xf32>
    %60 = arith.addf %5, %53 : vector<8x128xf32>
    %61 = vector.extract_strided_slice %1 {offsets = [1, 0], sizes = [1, 128], strides = [1, 1]} : vector<5x128xf32> to vector<1x128xf32>
    %cst_34 = arith.constant 1.000000e+00 : f32
    %62 = vector.broadcast %cst_34 : f32 to vector<1x128xf32>
    %63 = arith.subf %62, %61 : vector<1x128xf32>
    %64 = vector.broadcast %61 : vector<1x128xf32> to vector<8x128xf32>
    %65 = arith.mulf %59, %64 : vector<8x128xf32>
    %c1_35 = arith.constant 1 : index
    %c0_36 = arith.constant 0 : index
    %c0_37 = arith.constant 0 : index
    %66 = vector.load %arg3[%c1_35, %c0_36, %c0_37] : memref<5x128x128xf32, #tpu.memory_space<vmem>>, vector<1x128x128xf32>
    %67 = vector.shape_cast %66 : vector<1x128x128xf32> to vector<128x128xf32>
    %cst_38 = arith.constant dense<0.000000e+00> : vector<8x128xf32>
    %68 = tpu.matmul %65, %67, %cst_38 {dimension_numbers = #tpu.dot_dimension_numbers<[1], [0], [0], [1], [0, 0, 1, 1], [], []>} : vector<8x128xf32>, vector<128x128xf32>, vector<8x128xf32> -> vector<8x128xf32>
    %c1_39 = arith.constant 1 : index
    %c0_40 = arith.constant 0 : index
    %c0_41 = arith.constant 0 : index
    %69 = vector.load %arg4[%c1_39, %c0_40, %c0_41] : memref<5x1x128xf32, #tpu.memory_space<vmem>>, vector<1x1x128xf32>
    %70 = vector.shape_cast %69 : vector<1x1x128xf32> to vector<1x128xf32>
    %71 = vector.broadcast %70 : vector<1x128xf32> to vector<8x128xf32>
    %72 = arith.addf %68, %71 : vector<8x128xf32>
    %73 = math.tanh %72 : vector<8x128xf32>
    %cst_42 = arith.constant 0.000000e+00 : f32
    %74 = vector.broadcast %cst_42 : f32 to vector<8x128xf32>
    %75 = arith.maximumf %72, %74 : vector<8x128xf32>
    %76 = arith.select %4, %73, %75 : vector<8x128xi1>, vector<8x128xf32>
    %c2 = arith.constant 2 : index
    %c0_43 = arith.constant 0 : index
    %c0_44 = arith.constant 0 : index
    %77 = vector.load %arg5[%c2, %c0_43, %c0_44] : memref<10x128x128xf32, #tpu.memory_space<vmem>>, vector<1x128x128xf32>
    %78 = vector.shape_cast %77 : vector<1x128x128xf32> to vector<128x128xf32>
    %cst_45 = arith.constant dense<0.000000e+00> : vector<8x128xf32>
    %79 = tpu.matmul %76, %78, %cst_45 {dimension_numbers = #tpu.dot_dimension_numbers<[1], [0], [0], [1], [0, 0, 1, 1], [], []>} : vector<8x128xf32>, vector<128x128xf32>, vector<8x128xf32> -> vector<8x128xf32>
    %c2_46 = arith.constant 2 : index
    %c0_47 = arith.constant 0 : index
    %c0_48 = arith.constant 0 : index
    %80 = vector.load %arg6[%c2_46, %c0_47, %c0_48] : memref<10x1x128xf32, #tpu.memory_space<vmem>>, vector<1x1x128xf32>
    %81 = vector.shape_cast %80 : vector<1x1x128xf32> to vector<1x128xf32>
    %82 = vector.broadcast %81 : vector<1x128xf32> to vector<8x128xf32>
    %83 = arith.addf %79, %82 : vector<8x128xf32>
    %84 = math.tanh %83 : vector<8x128xf32>
    %cst_49 = arith.constant 0.000000e+00 : f32
    %85 = vector.broadcast %cst_49 : f32 to vector<8x128xf32>
    %86 = arith.maximumf %83, %85 : vector<8x128xf32>
    %87 = arith.select %4, %84, %86 : vector<8x128xi1>, vector<8x128xf32>
    %c3 = arith.constant 3 : index
    %c0_50 = arith.constant 0 : index
    %c0_51 = arith.constant 0 : index
    %88 = vector.load %arg5[%c3, %c0_50, %c0_51] : memref<10x128x128xf32, #tpu.memory_space<vmem>>, vector<1x128x128xf32>
    %89 = vector.shape_cast %88 : vector<1x128x128xf32> to vector<128x128xf32>
    %cst_52 = arith.constant dense<0.000000e+00> : vector<8x128xf32>
    %90 = tpu.matmul %87, %89, %cst_52 {dimension_numbers = #tpu.dot_dimension_numbers<[1], [0], [0], [1], [0, 0, 1, 1], [], []>} : vector<8x128xf32>, vector<128x128xf32>, vector<8x128xf32> -> vector<8x128xf32>
    %c3_53 = arith.constant 3 : index
    %c0_54 = arith.constant 0 : index
    %c0_55 = arith.constant 0 : index
    %91 = vector.load %arg6[%c3_53, %c0_54, %c0_55] : memref<10x1x128xf32, #tpu.memory_space<vmem>>, vector<1x1x128xf32>
    %92 = vector.shape_cast %91 : vector<1x1x128xf32> to vector<1x128xf32>
    %93 = vector.broadcast %92 : vector<1x128xf32> to vector<8x128xf32>
    %94 = arith.addf %90, %93 : vector<8x128xf32>
    %95 = math.tanh %94 : vector<8x128xf32>
    %cst_56 = arith.constant 0.000000e+00 : f32
    %96 = vector.broadcast %cst_56 : f32 to vector<8x128xf32>
    %97 = arith.maximumf %94, %96 : vector<8x128xf32>
    %98 = arith.select %4, %95, %97 : vector<8x128xi1>, vector<8x128xf32>
    %c1_57 = arith.constant 1 : index
    %c0_58 = arith.constant 0 : index
    %c0_59 = arith.constant 0 : index
    %99 = vector.load %arg7[%c1_57, %c0_58, %c0_59] : memref<5x128x256xf32, #tpu.memory_space<vmem>>, vector<1x128x256xf32>
    %100 = vector.shape_cast %99 : vector<1x128x256xf32> to vector<128x256xf32>
    %cst_60 = arith.constant dense<0.000000e+00> : vector<8x256xf32>
    %101 = tpu.matmul %98, %100, %cst_60 {dimension_numbers = #tpu.dot_dimension_numbers<[1], [0], [0], [1], [0, 0, 1, 1], [], []>} : vector<8x128xf32>, vector<128x256xf32>, vector<8x256xf32> -> vector<8x256xf32>
    %c1_61 = arith.constant 1 : index
    %c0_62 = arith.constant 0 : index
    %c0_63 = arith.constant 0 : index
    %102 = vector.load %arg8[%c1_61, %c0_62, %c0_63] : memref<5x1x256xf32, #tpu.memory_space<vmem>>, vector<1x1x256xf32>
    %103 = vector.shape_cast %102 : vector<1x1x256xf32> to vector<1x256xf32>
    %104 = vector.broadcast %103 : vector<1x256xf32> to vector<8x256xf32>
    %105 = arith.addf %101, %104 : vector<8x256xf32>
    %106 = vector.extract_strided_slice %105 {offsets = [0, 0], sizes = [8, 128], strides = [1, 1]} : vector<8x256xf32> to vector<8x128xf32>
    %107 = vector.broadcast %63 : vector<1x128xf32> to vector<8x128xf32>
    %108 = arith.mulf %106, %107 : vector<8x128xf32>
    %109 = vector.extract_strided_slice %105 {offsets = [0, 128], sizes = [8, 128], strides = [1, 1]} : vector<8x256xf32> to vector<8x128xf32>
    %110 = vector.broadcast %63 : vector<1x128xf32> to vector<8x128xf32>
    %111 = arith.mulf %109, %110 : vector<8x128xf32>
    %112 = math.exp %108 : vector<8x128xf32>
    %113 = arith.mulf %59, %112 : vector<8x128xf32>
    %114 = arith.addf %113, %111 : vector<8x128xf32>
    %115 = arith.addf %60, %108 : vector<8x128xf32>
    %116 = vector.extract_strided_slice %1 {offsets = [2, 0], sizes = [1, 128], strides = [1, 1]} : vector<5x128xf32> to vector<1x128xf32>
    %cst_64 = arith.constant 1.000000e+00 : f32
    %117 = vector.broadcast %cst_64 : f32 to vector<1x128xf32>
    %118 = arith.subf %117, %116 : vector<1x128xf32>
    %119 = vector.broadcast %116 : vector<1x128xf32> to vector<8x128xf32>
    %120 = arith.mulf %114, %119 : vector<8x128xf32>
    %c2_65 = arith.constant 2 : index
    %c0_66 = arith.constant 0 : index
    %c0_67 = arith.constant 0 : index
    %121 = vector.load %arg3[%c2_65, %c0_66, %c0_67] : memref<5x128x128xf32, #tpu.memory_space<vmem>>, vector<1x128x128xf32>
    %122 = vector.shape_cast %121 : vector<1x128x128xf32> to vector<128x128xf32>
    %cst_68 = arith.constant dense<0.000000e+00> : vector<8x128xf32>
    %123 = tpu.matmul %120, %122, %cst_68 {dimension_numbers = #tpu.dot_dimension_numbers<[1], [0], [0], [1], [0, 0, 1, 1], [], []>} : vector<8x128xf32>, vector<128x128xf32>, vector<8x128xf32> -> vector<8x128xf32>
    %c2_69 = arith.constant 2 : index
    %c0_70 = arith.constant 0 : index
    %c0_71 = arith.constant 0 : index
    %124 = vector.load %arg4[%c2_69, %c0_70, %c0_71] : memref<5x1x128xf32, #tpu.memory_space<vmem>>, vector<1x1x128xf32>
    %125 = vector.shape_cast %124 : vector<1x1x128xf32> to vector<1x128xf32>
    %126 = vector.broadcast %125 : vector<1x128xf32> to vector<8x128xf32>
    %127 = arith.addf %123, %126 : vector<8x128xf32>
    %128 = math.tanh %127 : vector<8x128xf32>
    %cst_72 = arith.constant 0.000000e+00 : f32
    %129 = vector.broadcast %cst_72 : f32 to vector<8x128xf32>
    %130 = arith.maximumf %127, %129 : vector<8x128xf32>
    %131 = arith.select %4, %128, %130 : vector<8x128xi1>, vector<8x128xf32>
    %c4 = arith.constant 4 : index
    %c0_73 = arith.constant 0 : index
    %c0_74 = arith.constant 0 : index
    %132 = vector.load %arg5[%c4, %c0_73, %c0_74] : memref<10x128x128xf32, #tpu.memory_space<vmem>>, vector<1x128x128xf32>
    %133 = vector.shape_cast %132 : vector<1x128x128xf32> to vector<128x128xf32>
    %cst_75 = arith.constant dense<0.000000e+00> : vector<8x128xf32>
    %134 = tpu.matmul %131, %133, %cst_75 {dimension_numbers = #tpu.dot_dimension_numbers<[1], [0], [0], [1], [0, 0, 1, 1], [], []>} : vector<8x128xf32>, vector<128x128xf32>, vector<8x128xf32> -> vector<8x128xf32>
    %c4_76 = arith.constant 4 : index
    %c0_77 = arith.constant 0 : index
    %c0_78 = arith.constant 0 : index
    %135 = vector.load %arg6[%c4_76, %c0_77, %c0_78] : memref<10x1x128xf32, #tpu.memory_space<vmem>>, vector<1x1x128xf32>
    %136 = vector.shape_cast %135 : vector<1x1x128xf32> to vector<1x128xf32>
    %137 = vector.broadcast %136 : vector<1x128xf32> to vector<8x128xf32>
    %138 = arith.addf %134, %137 : vector<8x128xf32>
    %139 = math.tanh %138 : vector<8x128xf32>
    %cst_79 = arith.constant 0.000000e+00 : f32
    %140 = vector.broadcast %cst_79 : f32 to vector<8x128xf32>
    %141 = arith.maximumf %138, %140 : vector<8x128xf32>
    %142 = arith.select %4, %139, %141 : vector<8x128xi1>, vector<8x128xf32>
    %c5 = arith.constant 5 : index
    %c0_80 = arith.constant 0 : index
    %c0_81 = arith.constant 0 : index
    %143 = vector.load %arg5[%c5, %c0_80, %c0_81] : memref<10x128x128xf32, #tpu.memory_space<vmem>>, vector<1x128x128xf32>
    %144 = vector.shape_cast %143 : vector<1x128x128xf32> to vector<128x128xf32>
    %cst_82 = arith.constant dense<0.000000e+00> : vector<8x128xf32>
    %145 = tpu.matmul %142, %144, %cst_82 {dimension_numbers = #tpu.dot_dimension_numbers<[1], [0], [0], [1], [0, 0, 1, 1], [], []>} : vector<8x128xf32>, vector<128x128xf32>, vector<8x128xf32> -> vector<8x128xf32>
    %c5_83 = arith.constant 5 : index
    %c0_84 = arith.constant 0 : index
    %c0_85 = arith.constant 0 : index
    %146 = vector.load %arg6[%c5_83, %c0_84, %c0_85] : memref<10x1x128xf32, #tpu.memory_space<vmem>>, vector<1x1x128xf32>
    %147 = vector.shape_cast %146 : vector<1x1x128xf32> to vector<1x128xf32>
    %148 = vector.broadcast %147 : vector<1x128xf32> to vector<8x128xf32>
    %149 = arith.addf %145, %148 : vector<8x128xf32>
    %150 = math.tanh %149 : vector<8x128xf32>
    %cst_86 = arith.constant 0.000000e+00 : f32
    %151 = vector.broadcast %cst_86 : f32 to vector<8x128xf32>
    %152 = arith.maximumf %149, %151 : vector<8x128xf32>
    %153 = arith.select %4, %150, %152 : vector<8x128xi1>, vector<8x128xf32>
    %c2_87 = arith.constant 2 : index
    %c0_88 = arith.constant 0 : index
    %c0_89 = arith.constant 0 : index
    %154 = vector.load %arg7[%c2_87, %c0_88, %c0_89] : memref<5x128x256xf32, #tpu.memory_space<vmem>>, vector<1x128x256xf32>
    %155 = vector.shape_cast %154 : vector<1x128x256xf32> to vector<128x256xf32>
    %cst_90 = arith.constant dense<0.000000e+00> : vector<8x256xf32>
    %156 = tpu.matmul %153, %155, %cst_90 {dimension_numbers = #tpu.dot_dimension_numbers<[1], [0], [0], [1], [0, 0, 1, 1], [], []>} : vector<8x128xf32>, vector<128x256xf32>, vector<8x256xf32> -> vector<8x256xf32>
    %c2_91 = arith.constant 2 : index
    %c0_92 = arith.constant 0 : index
    %c0_93 = arith.constant 0 : index
    %157 = vector.load %arg8[%c2_91, %c0_92, %c0_93] : memref<5x1x256xf32, #tpu.memory_space<vmem>>, vector<1x1x256xf32>
    %158 = vector.shape_cast %157 : vector<1x1x256xf32> to vector<1x256xf32>
    %159 = vector.broadcast %158 : vector<1x256xf32> to vector<8x256xf32>
    %160 = arith.addf %156, %159 : vector<8x256xf32>
    %161 = vector.extract_strided_slice %160 {offsets = [0, 0], sizes = [8, 128], strides = [1, 1]} : vector<8x256xf32> to vector<8x128xf32>
    %162 = vector.broadcast %118 : vector<1x128xf32> to vector<8x128xf32>
    %163 = arith.mulf %161, %162 : vector<8x128xf32>
    %164 = vector.extract_strided_slice %160 {offsets = [0, 128], sizes = [8, 128], strides = [1, 1]} : vector<8x256xf32> to vector<8x128xf32>
    %165 = vector.broadcast %118 : vector<1x128xf32> to vector<8x128xf32>
    %166 = arith.mulf %164, %165 : vector<8x128xf32>
    %167 = math.exp %163 : vector<8x128xf32>
    %168 = arith.mulf %114, %167 : vector<8x128xf32>
    %169 = arith.addf %168, %166 : vector<8x128xf32>
    %170 = arith.addf %115, %163 : vector<8x128xf32>
    %171 = vector.extract_strided_slice %1 {offsets = [3, 0], sizes = [1, 128], strides = [1, 1]} : vector<5x128xf32> to vector<1x128xf32>
    %cst_94 = arith.constant 1.000000e+00 : f32
    %172 = vector.broadcast %cst_94 : f32 to vector<1x128xf32>
    %173 = arith.subf %172, %171 : vector<1x128xf32>
    %174 = vector.broadcast %171 : vector<1x128xf32> to vector<8x128xf32>
    %175 = arith.mulf %169, %174 : vector<8x128xf32>
    %c3_95 = arith.constant 3 : index
    %c0_96 = arith.constant 0 : index
    %c0_97 = arith.constant 0 : index
    %176 = vector.load %arg3[%c3_95, %c0_96, %c0_97] : memref<5x128x128xf32, #tpu.memory_space<vmem>>, vector<1x128x128xf32>
    %177 = vector.shape_cast %176 : vector<1x128x128xf32> to vector<128x128xf32>
    %cst_98 = arith.constant dense<0.000000e+00> : vector<8x128xf32>
    %178 = tpu.matmul %175, %177, %cst_98 {dimension_numbers = #tpu.dot_dimension_numbers<[1], [0], [0], [1], [0, 0, 1, 1], [], []>} : vector<8x128xf32>, vector<128x128xf32>, vector<8x128xf32> -> vector<8x128xf32>
    %c3_99 = arith.constant 3 : index
    %c0_100 = arith.constant 0 : index
    %c0_101 = arith.constant 0 : index
    %179 = vector.load %arg4[%c3_99, %c0_100, %c0_101] : memref<5x1x128xf32, #tpu.memory_space<vmem>>, vector<1x1x128xf32>
    %180 = vector.shape_cast %179 : vector<1x1x128xf32> to vector<1x128xf32>
    %181 = vector.broadcast %180 : vector<1x128xf32> to vector<8x128xf32>
    %182 = arith.addf %178, %181 : vector<8x128xf32>
    %183 = math.tanh %182 : vector<8x128xf32>
    %cst_102 = arith.constant 0.000000e+00 : f32
    %184 = vector.broadcast %cst_102 : f32 to vector<8x128xf32>
    %185 = arith.maximumf %182, %184 : vector<8x128xf32>
    %186 = arith.select %4, %183, %185 : vector<8x128xi1>, vector<8x128xf32>
    %c6 = arith.constant 6 : index
    %c0_103 = arith.constant 0 : index
    %c0_104 = arith.constant 0 : index
    %187 = vector.load %arg5[%c6, %c0_103, %c0_104] : memref<10x128x128xf32, #tpu.memory_space<vmem>>, vector<1x128x128xf32>
    %188 = vector.shape_cast %187 : vector<1x128x128xf32> to vector<128x128xf32>
    %cst_105 = arith.constant dense<0.000000e+00> : vector<8x128xf32>
    %189 = tpu.matmul %186, %188, %cst_105 {dimension_numbers = #tpu.dot_dimension_numbers<[1], [0], [0], [1], [0, 0, 1, 1], [], []>} : vector<8x128xf32>, vector<128x128xf32>, vector<8x128xf32> -> vector<8x128xf32>
    %c6_106 = arith.constant 6 : index
    %c0_107 = arith.constant 0 : index
    %c0_108 = arith.constant 0 : index
    %190 = vector.load %arg6[%c6_106, %c0_107, %c0_108] : memref<10x1x128xf32, #tpu.memory_space<vmem>>, vector<1x1x128xf32>
    %191 = vector.shape_cast %190 : vector<1x1x128xf32> to vector<1x128xf32>
    %192 = vector.broadcast %191 : vector<1x128xf32> to vector<8x128xf32>
    %193 = arith.addf %189, %192 : vector<8x128xf32>
    %194 = math.tanh %193 : vector<8x128xf32>
    %cst_109 = arith.constant 0.000000e+00 : f32
    %195 = vector.broadcast %cst_109 : f32 to vector<8x128xf32>
    %196 = arith.maximumf %193, %195 : vector<8x128xf32>
    %197 = arith.select %4, %194, %196 : vector<8x128xi1>, vector<8x128xf32>
    %c7 = arith.constant 7 : index
    %c0_110 = arith.constant 0 : index
    %c0_111 = arith.constant 0 : index
    %198 = vector.load %arg5[%c7, %c0_110, %c0_111] : memref<10x128x128xf32, #tpu.memory_space<vmem>>, vector<1x128x128xf32>
    %199 = vector.shape_cast %198 : vector<1x128x128xf32> to vector<128x128xf32>
    %cst_112 = arith.constant dense<0.000000e+00> : vector<8x128xf32>
    %200 = tpu.matmul %197, %199, %cst_112 {dimension_numbers = #tpu.dot_dimension_numbers<[1], [0], [0], [1], [0, 0, 1, 1], [], []>} : vector<8x128xf32>, vector<128x128xf32>, vector<8x128xf32> -> vector<8x128xf32>
    %c7_113 = arith.constant 7 : index
    %c0_114 = arith.constant 0 : index
    %c0_115 = arith.constant 0 : index
    %201 = vector.load %arg6[%c7_113, %c0_114, %c0_115] : memref<10x1x128xf32, #tpu.memory_space<vmem>>, vector<1x1x128xf32>
    %202 = vector.shape_cast %201 : vector<1x1x128xf32> to vector<1x128xf32>
    %203 = vector.broadcast %202 : vector<1x128xf32> to vector<8x128xf32>
    %204 = arith.addf %200, %203 : vector<8x128xf32>
    %205 = math.tanh %204 : vector<8x128xf32>
    %cst_116 = arith.constant 0.000000e+00 : f32
    %206 = vector.broadcast %cst_116 : f32 to vector<8x128xf32>
    %207 = arith.maximumf %204, %206 : vector<8x128xf32>
    %208 = arith.select %4, %205, %207 : vector<8x128xi1>, vector<8x128xf32>
    %c3_117 = arith.constant 3 : index
    %c0_118 = arith.constant 0 : index
    %c0_119 = arith.constant 0 : index
    %209 = vector.load %arg7[%c3_117, %c0_118, %c0_119] : memref<5x128x256xf32, #tpu.memory_space<vmem>>, vector<1x128x256xf32>
    %210 = vector.shape_cast %209 : vector<1x128x256xf32> to vector<128x256xf32>
    %cst_120 = arith.constant dense<0.000000e+00> : vector<8x256xf32>
    %211 = tpu.matmul %208, %210, %cst_120 {dimension_numbers = #tpu.dot_dimension_numbers<[1], [0], [0], [1], [0, 0, 1, 1], [], []>} : vector<8x128xf32>, vector<128x256xf32>, vector<8x256xf32> -> vector<8x256xf32>
    %c3_121 = arith.constant 3 : index
    %c0_122 = arith.constant 0 : index
    %c0_123 = arith.constant 0 : index
    %212 = vector.load %arg8[%c3_121, %c0_122, %c0_123] : memref<5x1x256xf32, #tpu.memory_space<vmem>>, vector<1x1x256xf32>
    %213 = vector.shape_cast %212 : vector<1x1x256xf32> to vector<1x256xf32>
    %214 = vector.broadcast %213 : vector<1x256xf32> to vector<8x256xf32>
    %215 = arith.addf %211, %214 : vector<8x256xf32>
    %216 = vector.extract_strided_slice %215 {offsets = [0, 0], sizes = [8, 128], strides = [1, 1]} : vector<8x256xf32> to vector<8x128xf32>
    %217 = vector.broadcast %173 : vector<1x128xf32> to vector<8x128xf32>
    %218 = arith.mulf %216, %217 : vector<8x128xf32>
    %219 = vector.extract_strided_slice %215 {offsets = [0, 128], sizes = [8, 128], strides = [1, 1]} : vector<8x256xf32> to vector<8x128xf32>
    %220 = vector.broadcast %173 : vector<1x128xf32> to vector<8x128xf32>
    %221 = arith.mulf %219, %220 : vector<8x128xf32>
    %222 = math.exp %218 : vector<8x128xf32>
    %223 = arith.mulf %169, %222 : vector<8x128xf32>
    %224 = arith.addf %223, %221 : vector<8x128xf32>
    %225 = arith.addf %170, %218 : vector<8x128xf32>
    %226 = vector.extract_strided_slice %1 {offsets = [4, 0], sizes = [1, 128], strides = [1, 1]} : vector<5x128xf32> to vector<1x128xf32>
    %cst_124 = arith.constant 1.000000e+00 : f32
    %227 = vector.broadcast %cst_124 : f32 to vector<1x128xf32>
    %228 = arith.subf %227, %226 : vector<1x128xf32>
    %229 = vector.broadcast %226 : vector<1x128xf32> to vector<8x128xf32>
    %230 = arith.mulf %224, %229 : vector<8x128xf32>
    %c4_125 = arith.constant 4 : index
    %c0_126 = arith.constant 0 : index
    %c0_127 = arith.constant 0 : index
    %231 = vector.load %arg3[%c4_125, %c0_126, %c0_127] : memref<5x128x128xf32, #tpu.memory_space<vmem>>, vector<1x128x128xf32>
    %232 = vector.shape_cast %231 : vector<1x128x128xf32> to vector<128x128xf32>
    %cst_128 = arith.constant dense<0.000000e+00> : vector<8x128xf32>
    %233 = tpu.matmul %230, %232, %cst_128 {dimension_numbers = #tpu.dot_dimension_numbers<[1], [0], [0], [1], [0, 0, 1, 1], [], []>} : vector<8x128xf32>, vector<128x128xf32>, vector<8x128xf32> -> vector<8x128xf32>
    %c4_129 = arith.constant 4 : index
    %c0_130 = arith.constant 0 : index
    %c0_131 = arith.constant 0 : index
    %234 = vector.load %arg4[%c4_129, %c0_130, %c0_131] : memref<5x1x128xf32, #tpu.memory_space<vmem>>, vector<1x1x128xf32>
    %235 = vector.shape_cast %234 : vector<1x1x128xf32> to vector<1x128xf32>
    %236 = vector.broadcast %235 : vector<1x128xf32> to vector<8x128xf32>
    %237 = arith.addf %233, %236 : vector<8x128xf32>
    %238 = math.tanh %237 : vector<8x128xf32>
    %cst_132 = arith.constant 0.000000e+00 : f32
    %239 = vector.broadcast %cst_132 : f32 to vector<8x128xf32>
    %240 = arith.maximumf %237, %239 : vector<8x128xf32>
    %241 = arith.select %4, %238, %240 : vector<8x128xi1>, vector<8x128xf32>
    %c8 = arith.constant 8 : index
    %c0_133 = arith.constant 0 : index
    %c0_134 = arith.constant 0 : index
    %242 = vector.load %arg5[%c8, %c0_133, %c0_134] : memref<10x128x128xf32, #tpu.memory_space<vmem>>, vector<1x128x128xf32>
    %243 = vector.shape_cast %242 : vector<1x128x128xf32> to vector<128x128xf32>
    %cst_135 = arith.constant dense<0.000000e+00> : vector<8x128xf32>
    %244 = tpu.matmul %241, %243, %cst_135 {dimension_numbers = #tpu.dot_dimension_numbers<[1], [0], [0], [1], [0, 0, 1, 1], [], []>} : vector<8x128xf32>, vector<128x128xf32>, vector<8x128xf32> -> vector<8x128xf32>
    %c8_136 = arith.constant 8 : index
    %c0_137 = arith.constant 0 : index
    %c0_138 = arith.constant 0 : index
    %245 = vector.load %arg6[%c8_136, %c0_137, %c0_138] : memref<10x1x128xf32, #tpu.memory_space<vmem>>, vector<1x1x128xf32>
    %246 = vector.shape_cast %245 : vector<1x1x128xf32> to vector<1x128xf32>
    %247 = vector.broadcast %246 : vector<1x128xf32> to vector<8x128xf32>
    %248 = arith.addf %244, %247 : vector<8x128xf32>
    %249 = math.tanh %248 : vector<8x128xf32>
    %cst_139 = arith.constant 0.000000e+00 : f32
    %250 = vector.broadcast %cst_139 : f32 to vector<8x128xf32>
    %251 = arith.maximumf %248, %250 : vector<8x128xf32>
    %252 = arith.select %4, %249, %251 : vector<8x128xi1>, vector<8x128xf32>
    %c9 = arith.constant 9 : index
    %c0_140 = arith.constant 0 : index
    %c0_141 = arith.constant 0 : index
    %253 = vector.load %arg5[%c9, %c0_140, %c0_141] : memref<10x128x128xf32, #tpu.memory_space<vmem>>, vector<1x128x128xf32>
    %254 = vector.shape_cast %253 : vector<1x128x128xf32> to vector<128x128xf32>
    %cst_142 = arith.constant dense<0.000000e+00> : vector<8x128xf32>
    %255 = tpu.matmul %252, %254, %cst_142 {dimension_numbers = #tpu.dot_dimension_numbers<[1], [0], [0], [1], [0, 0, 1, 1], [], []>} : vector<8x128xf32>, vector<128x128xf32>, vector<8x128xf32> -> vector<8x128xf32>
    %c9_143 = arith.constant 9 : index
    %c0_144 = arith.constant 0 : index
    %c0_145 = arith.constant 0 : index
    %256 = vector.load %arg6[%c9_143, %c0_144, %c0_145] : memref<10x1x128xf32, #tpu.memory_space<vmem>>, vector<1x1x128xf32>
    %257 = vector.shape_cast %256 : vector<1x1x128xf32> to vector<1x128xf32>
    %258 = vector.broadcast %257 : vector<1x128xf32> to vector<8x128xf32>
    %259 = arith.addf %255, %258 : vector<8x128xf32>
    %260 = math.tanh %259 : vector<8x128xf32>
    %cst_146 = arith.constant 0.000000e+00 : f32
    %261 = vector.broadcast %cst_146 : f32 to vector<8x128xf32>
    %262 = arith.maximumf %259, %261 : vector<8x128xf32>
    %263 = arith.select %4, %260, %262 : vector<8x128xi1>, vector<8x128xf32>
    %c4_147 = arith.constant 4 : index
    %c0_148 = arith.constant 0 : index
    %c0_149 = arith.constant 0 : index
    %264 = vector.load %arg7[%c4_147, %c0_148, %c0_149] : memref<5x128x256xf32, #tpu.memory_space<vmem>>, vector<1x128x256xf32>
    %265 = vector.shape_cast %264 : vector<1x128x256xf32> to vector<128x256xf32>
    %cst_150 = arith.constant dense<0.000000e+00> : vector<8x256xf32>
    %266 = tpu.matmul %263, %265, %cst_150 {dimension_numbers = #tpu.dot_dimension_numbers<[1], [0], [0], [1], [0, 0, 1, 1], [], []>} : vector<8x128xf32>, vector<128x256xf32>, vector<8x256xf32> -> vector<8x256xf32>
    %c4_151 = arith.constant 4 : index
    %c0_152 = arith.constant 0 : index
    %c0_153 = arith.constant 0 : index
    %267 = vector.load %arg8[%c4_151, %c0_152, %c0_153] : memref<5x1x256xf32, #tpu.memory_space<vmem>>, vector<1x1x256xf32>
    %268 = vector.shape_cast %267 : vector<1x1x256xf32> to vector<1x256xf32>
    %269 = vector.broadcast %268 : vector<1x256xf32> to vector<8x256xf32>
    %270 = arith.addf %266, %269 : vector<8x256xf32>
    %271 = vector.extract_strided_slice %270 {offsets = [0, 0], sizes = [8, 128], strides = [1, 1]} : vector<8x256xf32> to vector<8x128xf32>
    %272 = vector.broadcast %228 : vector<1x128xf32> to vector<8x128xf32>
    %273 = arith.mulf %271, %272 : vector<8x128xf32>
    %274 = vector.extract_strided_slice %270 {offsets = [0, 128], sizes = [8, 128], strides = [1, 1]} : vector<8x256xf32> to vector<8x128xf32>
    %275 = vector.broadcast %228 : vector<1x128xf32> to vector<8x128xf32>
    %276 = arith.mulf %274, %275 : vector<8x128xf32>
    %277 = math.exp %273 : vector<8x128xf32>
    %278 = arith.mulf %224, %277 : vector<8x128xf32>
    %279 = arith.addf %278, %276 : vector<8x128xf32>
    %280 = arith.addf %225, %273 : vector<8x128xf32>
    %c0_154 = arith.constant 0 : index
    %c0_155 = arith.constant 0 : index
    %281 = vector.load %arg9[%c0_154, %c0_155] : memref<8x128xf32, #tpu.memory_space<vmem>>, vector<8x128xf32>
    tpu.vector_store %arg9[%c0_154, %c0_155], %279 {strides = array<i32>} : memref<8x128xf32, #tpu.memory_space<vmem>>, vector<8x128xf32>,
    %c0_156 = arith.constant 0 : index
    %c0_157 = arith.constant 0 : index
    %282 = vector.load %arg10[%c0_156, %c0_157] : memref<8x128xf32, #tpu.memory_space<vmem>>, vector<8x128xf32>
    tpu.vector_store %arg10[%c0_156, %c0_157], %280 {strides = array<i32>} : memref<8x128xf32, #tpu.memory_space<vmem>>, vector<8x128xf32>,
    return
  }
  func.func @transform_0(%arg0: i32) -> (i32, i32) {
    %c0_i32 = arith.constant 0 : i32
    %c0_i32_0 = arith.constant 0 : i32
    return %arg0, %c0_i32 : i32, i32
  }
  func.func @transform_1(%arg0: i32) -> (i32, i32) {
    %c0_i32 = arith.constant 0 : i32
    %c0_i32_0 = arith.constant 0 : i32
    %c0_i32_1 = arith.constant 0 : i32
    return %c0_i32, %c0_i32_0 : i32, i32
  }
  func.func @transform_2(%arg0: i32) -> (i32, i32, i32) {
    %c0_i32 = arith.constant 0 : i32
    %c0_i32_0 = arith.constant 0 : i32
    %c0_i32_1 = arith.constant 0 : i32
    %c0_i32_2 = arith.constant 0 : i32
    return %c0_i32, %c0_i32_0, %c0_i32_1 : i32, i32, i32
  }
  func.func @transform_3(%arg0: i32) -> (i32, i32, i32) {
    %c0_i32 = arith.constant 0 : i32
    %c0_i32_0 = arith.constant 0 : i32
    %c0_i32_1 = arith.constant 0 : i32
    %c0_i32_2 = arith.constant 0 : i32
    return %c0_i32, %c0_i32_0, %c0_i32_1 : i32, i32, i32
  }
  func.func @transform_4(%arg0: i32) -> (i32, i32, i32) {
    %c0_i32 = arith.constant 0 : i32
    %c0_i32_0 = arith.constant 0 : i32
    %c0_i32_1 = arith.constant 0 : i32
    %c0_i32_2 = arith.constant 0 : i32
    return %c0_i32, %c0_i32_0, %c0_i32_1 : i32, i32, i32
  }
  func.func @transform_5(%arg0: i32) -> (i32, i32, i32) {
    %c0_i32 = arith.constant 0 : i32
    %c0_i32_0 = arith.constant 0 : i32
    %c0_i32_1 = arith.constant 0 : i32
    %c0_i32_2 = arith.constant 0 : i32
    return %c0_i32, %c0_i32_0, %c0_i32_1 : i32, i32, i32
  }
  func.func @transform_6(%arg0: i32) -> (i32, i32, i32) {
    %c0_i32 = arith.constant 0 : i32
    %c0_i32_0 = arith.constant 0 : i32
    %c0_i32_1 = arith.constant 0 : i32
    %c0_i32_2 = arith.constant 0 : i32
    return %c0_i32, %c0_i32_0, %c0_i32_1 : i32, i32, i32
  }
  func.func @transform_7(%arg0: i32) -> (i32, i32, i32) {
    %c0_i32 = arith.constant 0 : i32
    %c0_i32_0 = arith.constant 0 : i32
    %c0_i32_1 = arith.constant 0 : i32
    %c0_i32_2 = arith.constant 0 : i32
    return %c0_i32, %c0_i32_0, %c0_i32_1 : i32, i32, i32
  }
  func.func @transform_8(%arg0: i32) -> (i32, i32) {
    %c0_i32 = arith.constant 0 : i32
    %c0_i32_0 = arith.constant 0 : i32
    return %arg0, %c0_i32 : i32, i32
  }
  func.func @transform_9(%arg0: i32) -> (i32, i32) {
    %c0_i32 = arith.constant 0 : i32
    %c0_i32_0 = arith.constant 0 : i32
    return %arg0, %c0_i32 : i32, i32
  }
}

</mosaic_0001>

<bundles_post_ra>
// kernel: tpu_custom_call.1
= control target key start
LH: loop header
LB: loop body
LE: loop exit
PB: predicated region body
PF: predicated region fallthrough
CT: control target
= control target key end

     0   :  { %15 = vsyncpa [#allocation3], 0  ;;  %s4363_s0 = inlined_call_operand.hbm [shape: f32[8,128], index: 0, kind: input, shape index: {}]   ;;  %s4364_s1 = inlined_call_operand.hbm [shape: f32[5,128], index: 1, kind: input, shape index: {}]   ;;  %s4365_s2 = inlined_call_operand.hbm [shape: f32[5,128,128], index: 2, kind: input, shape index: {}]   ;;  %s4366_s3 = inlined_call_operand.hbm [shape: f32[5,1,128], index: 3, kind: input, shape index: {}]   ;;  %s4367_s4 = inlined_call_operand.hbm [shape: f32[10,128,128], index: 4, kind: input, shape index: {}]   ;;  %s4368_s5 = inlined_call_operand.vmem [shape: f32[10,1,128], index: 5, kind: input, shape index: {}]   ;;  %s4369_s6 = inlined_call_operand.hbm [shape: f32[5,128,256], index: 6, kind: input, shape index: {}]   ;;  %s4370_s7 = inlined_call_operand.vmem [shape: f32[5,1,256], index: 7, kind: input, shape index: {}]   ;;  %s4371_s8 = inlined_call_operand.hbm [shape: f32[8,128], index: 8, kind: output, shape index: {0}]   ;;  %s4372_s9 = inlined_call_operand.hbm [shape: f32[8,128], index: 9, kind: output, shape index: {1}]  }
   0x1   :  { %16 = vsyncpa [#allocation6], 0 }
   0x2   :  { %17 = vsyncpa [#allocation9], 0 }
   0x3   :  { %18 = vsyncpa [#allocation12], 0 }
   0x4   :  { %19 = vsyncpa [#allocation4], 0 }
   0x5   :  { %20 = vsyncpa [#allocation15], 0  ;;  %s3853_s30 = smov [#allocation5]   ;;  %s3854_s11 = smov [#allocation8]  }
   0x6   :  { %s37_s10 = sshll.u32 %s3853_s30, 4  ;;  %s58_s12 = sshll.u32 %s3854_s11, 4  ;;  %s38_s10 = int_to_ptr.vmem [resolvable:$true] %s37_s10  ;;  %s3919_s12 = int_to_ptr.vmem [resolvable:$true] %s58_s12 }
   0x7   :  { %s3665_s15 = scalar_lea.hbm %s4364_s1, 128 }
   0x8   :  { %p3666_p0 = scmp.ne.s32.totalorder %s4364_s1, %s3665_s15  ;;  %p3669_p1 = scmp.lt.u32.totalorder %s3665_s15, %s4364_s1 }
   0xa   :  { %p3671_p2 = pnand %p3669_p1, %p3666_p0 }
   0xc   :  { %3674 = shalt.err (!%p3671_p2)
}
   0xd   :  { %s3675_s20 = scalar_lea.vmem %s38_s10, 128  ;;  %p3680_p4 = scmp.lt.s32.totalorder %s38_s10, %s38_s10 }
   0xe   :  { %p3676_p3 = scmp.ne.s32.totalorder %s38_s10, %s3675_s20  ;;  %p3681_p5 = scmp.lt.s32.totalorder %s3675_s20, %s3675_s20 }
  0x10   :  { %p3682_p6 = por %p3681_p5, %p3680_p4 }
  0x12   :  { %p3683_p7 = pnand %p3682_p6, %p3676_p3 }
  0x14   :  { %3686 = shalt.err (!%p3683_p7)
}
  0x15   :  { %40 = dma.hbm_to_vmem [thread:$0]  %s4364_s1, 128, %s38_s10, [#allocation6]  }
  0x16   :  { %s3687_s25 = scalar_lea.hbm %s4366_s3, 80 }
  0x17   :  { %p3688_p8 = scmp.ne.s32.totalorder %s4366_s3, %s3687_s25  ;;  %p3691_p9 = scmp.lt.u32.totalorder %s3687_s25, %s4366_s3 }
  0x19   :  { %p3693_p10 = pnand %p3691_p9, %p3688_p8 }
  0x1b   :  { %3696 = shalt.err (!%p3693_p10)
}
  0x1c   :  { %s3697_s30 = scalar_lea.vmem %s3919_s12, 80  ;;  %s3701_s1 = scalar_lea.vmem %s3919_s12, 96 }
  0x1d   :  { %p3698_p11 = scmp.ne.s32.totalorder %s3919_s12, %s3697_s30  ;;  %p3702_p12 = scmp.lt.s32.totalorder %s3919_s12, %s3919_s12 }
  0x1e   :  { %p3703_p13 = scmp.lt.s32.totalorder %s3701_s1, %s3697_s30 }
  0x20   :  { %p3704_p0 = por %p3703_p13, %p3702_p12 }
  0x22   :  { %p3705_p1 = pnand %p3704_p0, %p3698_p11 }
  0x24   :  { %3708 = shalt.err (!%p3705_p1)
}
  0x25   :  { %s3855_s10 = smov 16   ;;  %s3856_s11 = smov 1  }
  0x26   :  { %64 = dma.hbm_to_vmem [thread:$0]  %s4366_s3, 80, %s3919_s12, [#allocation9], %s3855_s10, %s3855_s10, %s3856_s11  }
  0x27   :  { %s3857_s15 = smov [#allocation2]   ;;  %s3858_s17 = smov [#allocation7]  }
  0x28   :  { %s27_s16 = sshll.u32 %s3857_s15, 4  ;;  %s46_s18 = sshll.u32 %s3858_s17, 4  ;;  %s28_s16 = int_to_ptr.vmem [resolvable:$true] %s27_s16  ;;  %s3953_s18 = int_to_ptr.vmem [resolvable:$true] %s46_s18 }
  0x29   :  { %s3709_s21 = scalar_lea.hbm %s4363_s0, 128 }
  0x2a   :  { %p3710_p2 = scmp.ne.s32.totalorder %s4363_s0, %s3709_s21  ;;  %p3713_p3 = scmp.lt.u32.totalorder %s3709_s21, %s4363_s0 }
  0x2c   :  { %p3715_p4 = pnand %p3713_p3, %p3710_p2 }
  0x2e   :  { %3718 = shalt.err (!%p3715_p4)
}
  0x2f   :  { %s3719_s3 = scalar_lea.vmem %s28_s16, 128  ;;  %p3724_p6 = scmp.lt.s32.totalorder %s28_s16, %s28_s16 }
  0x30   :  { %p3720_p5 = scmp.ne.s32.totalorder %s28_s16, %s3719_s3  ;;  %p3725_p7 = scmp.lt.s32.totalorder %s3719_s3, %s3719_s3 }
  0x32   :  { %p3726_p8 = por %p3725_p7, %p3724_p6 }
  0x34   :  { %p3727_p9 = pnand %p3726_p8, %p3720_p5 }
  0x36   :  { %3730 = shalt.err (!%p3727_p9)
}
  0x37   :  { %30 = dma.hbm_to_vmem [thread:$0]  %s4363_s0, 128, %s28_s16, [#allocation3]  }
  0x38   :  { %s3731_s29 = scalar_lea.hbm %s4365_s2, 10240 }
  0x39   :  { %p3732_p10 = scmp.ne.s32.totalorder %s4365_s2, %s3731_s29  ;;  %p3735_p11 = scmp.lt.u32.totalorder %s3731_s29, %s4365_s2 }
  0x3b   :  { %p3737_p12 = pnand %p3735_p11, %p3732_p10 }
  0x3d   :  { %3740 = shalt.err (!%p3737_p12)
}
  0x3e   :  { %s3741_s14 = scalar_lea.vmem %s3953_s18, 10240  ;;  %p3746_p0 = scmp.lt.s32.totalorder %s3953_s18, %s3953_s18 }
  0x3f   :  { %p3742_p13 = scmp.ne.s32.totalorder %s3953_s18, %s3741_s14  ;;  %p3747_p1 = scmp.lt.s32.totalorder %s3741_s14, %s3741_s14 }
  0x41   :  { %p3748_p2 = por %p3747_p1, %p3746_p0 }
  0x43   :  { %p3749_p3 = pnand %p3748_p2, %p3742_p13 }
  0x45   :  { %3752 = shalt.err (!%p3749_p3)
}
  0x46   :  { %s3859_s0 = smov 128   ;;  %s3860_s15 = smov 8  }
  0x47   :  { %52 = dma.hbm_to_vmem [thread:$0]  %s4365_s2, 10240, %s3953_s18, [#allocation6], %s3859_s0, %s3859_s0, %s3860_s15  }
  0x48   :  { %s3861_s19 = smov [#allocation10]   ;;  %s3862_s21 = smov [#allocation11]  }
  0x49   :  { %s70_s20 = sshll.u32 %s3861_s19, 4  ;;  %s84_s22 = sshll.u32 %s3862_s21, 4  ;;  %s71_s20 = int_to_ptr.vmem [resolvable:$true] %s70_s20  ;;  %s3984_s22 = int_to_ptr.vmem [resolvable:$true] %s84_s22 }
  0x4a   :  { %s3753_s25 = scalar_lea.hbm %s4367_s4, 20480 }
  0x4b   :  { %p3754_p4 = scmp.ne.s32.totalorder %s4367_s4, %s3753_s25  ;;  %p3757_p5 = scmp.lt.u32.totalorder %s3753_s25, %s4367_s4 }
  0x4d   :  { %p3759_p6 = pnand %p3757_p5, %p3754_p4 }
  0x4f   :  { %3762 = shalt.err (!%p3759_p6)
}
  0x50   :  { %s3763_s2 = scalar_lea.vmem %s71_s20, 20480  ;;  %p3768_p8 = scmp.lt.s32.totalorder %s71_s20, %s71_s20 }
  0x51   :  { %p3764_p7 = scmp.ne.s32.totalorder %s71_s20, %s3763_s2  ;;  %p3769_p9 = scmp.lt.s32.totalorder %s3763_s2, %s3763_s2 }
  0x53   :  { %p3770_p10 = por %p3769_p9, %p3768_p8 }
  0x55   :  { %p3771_p11 = pnand %p3770_p10, %p3764_p7 }
  0x57   :  { %3774 = shalt.err (!%p3771_p11)
}
  0x58   :  { %76 = dma.hbm_to_vmem [thread:$0]  %s4367_s4, 20480, %s71_s20, [#allocation9], %s3859_s0, %s3859_s0, %s3860_s15  }
  0x59   :  { %s3775_s1 = scalar_lea.hbm %s4369_s6, 20480 }
  0x5a   :  { %p3776_p12 = scmp.ne.s32.totalorder %s4369_s6, %s3775_s1  ;;  %p3779_p13 = scmp.lt.u32.totalorder %s3775_s1, %s4369_s6 }
  0x5c   :  { %p3781_p0 = pnand %p3779_p13, %p3776_p12 }
  0x5e   :  { %3784 = shalt.err (!%p3781_p0)
}
  0x5f   :  { %s3785_s17 = scalar_lea.vmem %s3984_s22, 20480  ;;  %p3790_p2 = scmp.lt.s32.totalorder %s3984_s22, %s3984_s22 }
  0x60   :  { %p3786_p1 = scmp.ne.s32.totalorder %s3984_s22, %s3785_s17  ;;  %p3791_p3 = scmp.lt.s32.totalorder %s3785_s17, %s3785_s17 }
  0x62   :  { %p3792_p4 = por %p3791_p3, %p3790_p2 }
  0x64   :  { %p3793_p5 = pnand %p3792_p4, %p3786_p1 }
  0x66   :  { %3796 = shalt.err (!%p3793_p5)
}
  0x67   :  { %s3863_s4 = smov 256  }
  0x68   :  { %90 = dma.hbm_to_vmem [thread:$0]  %s4369_s6, 20480, %s3984_s22, [#allocation12], %s3863_s4, %s3863_s4, %s3855_s10  }
  0x69   :  { %3841 = dma.done.wait [#allocation3], 128  }
  0x6a   :  { %3842 = vsyncadd [#allocation3], 4294967168 }
  0x6b   :  { %3843 = dma.done.wait [#allocation6], 10368  }
  0x6c   :  { %3844 = vsyncadd [#allocation6], 4294956928 }
  0x6d   :  { %3845 = dma.done.wait [#allocation9], 20560  }
  0x6e   :  { %3846 = vsyncadd [#allocation9], 4294946736 }
  0x6f   :  { %3847 = dma.done.wait [#allocation12], 20480  }
  0x70   :  { %3848 = vsyncadd [#allocation12], 4294946816  ;;  %v3864_v0 = vmov 0.0|0.0   ;;  %vm3865_vm0 = vmmov 0   ;;  %v3866_v1 = vmov 0.0   ;;  %v122_v2 = vld [vmem:[#allocation7] sm:$0xff]  ;;  %v113_v25 = vlaneseq }
  0x71   :  { %3088 = vmatprep.subr.bf16.mxu0 %v3864_v0  ;;  %2595 = vmatprep.mubr.msk.f32.mxu0 %vm3865_vm0, %v3866_v1  ;;  %v123_v3 = vld [vmem:[#allocation7 + $0x8] sm:$0xff]  ;;  %v124_v4 = vld [vmem:[#allocation7 + $0x10] sm:$0xff]  ;;  %v125_v6 = vld [vmem:[#allocation7 + $0x18] sm:$0xff] }
  0x72   :  { %3112 = vmatprep.subr.bf16.mxu1 %v3864_v0  ;;  %2630 = vmatprep.mubr.msk.f32.mxu1 %vm3865_vm0, %v3866_v1  ;;  %v3089_v5 = vpack.c.bf16 %v123_v3, %v122_v2  ;;  %v3092_v7 = vpack.c.bf16 %v125_v6, %v124_v4  ;;  %v126_v8 = vld [vmem:[#allocation7 + $0x20] sm:$0xff]  ;;  %v127_v9 = vld [vmem:[#allocation7 + $0x28] sm:$0xff]  ;;  %v220_v12 = vld [vmem:[#allocation10 + $0x10] sm:$0xff]  ;;  %v4029_v32 = vshrl.u32 %v113_v25, 7 }
  0x73   :  { %v218_v10 = vld [vmem:[#allocation10] sm:$0xff]  ;;  %v219_v11 = vld [vmem:[#allocation10 + $0x8] sm:$0xff]  ;;  %v3095_v13 = vpack.c.bf16 %v127_v9, %v126_v8  ;;  %v221_v15 = vld [vmem:[#allocation10 + $0x18] sm:$0xff] }
  0x74   :  { %3090 = vmatpush3.bf16.msra.mxu0 %v3089_v5  ;;  %v3113_v14 = vpack.c.bf16 %v219_v11, %v218_v10  ;;  %v128_v16 = vld [vmem:[#allocation7 + $0x30] sm:$0xff]  ;;  %v129_v17 = vld [vmem:[#allocation7 + $0x38] sm:$0xff]  ;;  %v3116_v18 = vpack.c.bf16 %v221_v15, %v220_v12  ;;  %v222_v19 = vld [vmem:[#allocation10 + $0x20] sm:$0xff]  ;;  %v4034_v36 = vsub.s32 0, %v4029_v32  ;;  %v4057_v11 = vand.u32 127, %v113_v25 }
  0x75   :  { %3091 = vmatprep.subr.bf16.mxu0 %v3864_v0  ;;  %v223_v20 = vld [vmem:[#allocation10 + $0x28] sm:$0xff]  ;;  %v3098_v21 = vpack.c.bf16 %v129_v17, %v128_v16  ;;  %v130_v22 = vld [vmem:[#allocation7 + $0x40] sm:$0xff]  ;;  %v224_v26 = vld [vmem:[#allocation10 + $0x30] sm:$0xff] }
  0x76   :  { %3114 = vmatpush3.bf16.msra.mxu1 %v3113_v14  ;;  %v131_v23 = vld [vmem:[#allocation7 + $0x48] sm:$0xff]  ;;  %v3119_v24 = vpack.c.bf16 %v223_v20, %v222_v19  ;;  %v225_v27 = vld [vmem:[#allocation10 + $0x38] sm:$0xff]  ;;  %v132_v29 = vld [vmem:[#allocation7 + $0x50] sm:$0xff]  ;;  %vm115_vm1 = vcmp.lt.s32.totalorder %v4057_v11, 64 }
  0x77   :  { %3115 = vmatprep.subr.bf16.mxu1 %v3864_v0  ;;  %v3101_v28 = vpack.c.bf16 %v131_v23, %v130_v22  ;;  %v133_v30 = vld [vmem:[#allocation7 + $0x58] sm:$0xff]  ;;  %v3122_v31 = vpack.c.bf16 %v225_v27, %v224_v26  ;;  %v134_v34 = vld [vmem:[#allocation7 + $0x60] sm:$0xff]  ;;  %v135_v35 = vld [vmem:[#allocation7 + $0x68] sm:$0xff] }
  0x78   :  { %3093 = vmatpush3.bf16.msra.mxu0 %v3092_v7  ;;  %v3104_v33 = vpack.c.bf16 %v133_v30, %v132_v29  ;;  %v3107_v37 = vpack.c.bf16 %v135_v35, %v134_v34  ;;  %v4037_v38 = vld [vmem:[#allocation5] sm:$0x1f]  ;;  %v136_v39 = vld [vmem:[#allocation7 + $0x70] sm:$0xff]  ;;  %v226_v45 = vld [vmem:[#allocation10 + $0x40] sm:$0xff] }
  0x79   :  { %3094 = vmatprep.subr.bf16.mxu0 %v3864_v0  ;;  %v137_v40 = vld [vmem:[#allocation7 + $0x78] sm:$0xff]  ;;  %v120_v41 = vrot.slane %v4037_v38, %v4034_v36  ;;  %v4042_v43 = vld [vmem:[#allocation2] sm:$0xff]  ;;  %v230_v51 = vld [vmem:[#allocation10 + $0x60] sm:$0xff] }
  0x7a   :  { %3117 = vmatpush3.bf16.msra.mxu1 %v3116_v18  ;;  %v3110_v42 = vpack.c.bf16 %v137_v40, %v136_v39  ;;  %v227_v46 = vld [vmem:[#allocation10 + $0x48] sm:$0xff]  ;;  %v228_v48 = vld [vmem:[#allocation10 + $0x50] sm:$0xff]  ;;  %v229_v49 = vld [vmem:[#allocation10 + $0x58] sm:$0xff] }
  0x7b   :  { %3118 = vmatprep.subr.bf16.mxu1 %v3864_v0  ;;  %v121_v44 = vmul.f32 %v120_v41, %v4042_v43  ;;  %v3125_v47 = vpack.c.bf16 %v227_v46, %v226_v45  ;;  %v3128_v50 = vpack.c.bf16 %v229_v49, %v228_v48  ;;  %v231_v52 = vld [vmem:[#allocation10 + $0x68] sm:$0xff]  ;;  %v232_v54 = vld [vmem:[#allocation10 + $0x70] sm:$0xff]  ;;  %v233_v55 = vld [vmem:[#allocation10 + $0x78] sm:$0xff] }
  0x7c   :  { %3096 = vmatpush3.bf16.msra.mxu0 %v3095_v13  ;;  %v3131_v53 = vpack.c.bf16 %v231_v52, %v230_v51  ;;  %v3134_v56 = vpack.c.bf16 %v233_v55, %v232_v54  ;;  %v315_v57 = vld [vmem:[#allocation10 + $0x80] sm:$0xff]  ;;  %v316_v58 = vld [vmem:[#allocation10 + $0x88] sm:$0xff]  ;;  %v317_v59 = vld [vmem:[#allocation10 + $0x90] sm:$0xff] }
  0x7d   :  { %3097 = vmatprep.subr.bf16.mxu0 %v3864_v0  ;;  %v3137_v60 = vpack.c.bf16 %v316_v58, %v315_v57  ;;  %v318_v61 = vld [vmem:[#allocation10 + $0x98] sm:$0xff]  ;;  %v319_v63 = vld [vmem:[#allocation10 + $0xa0] sm:$0xff]  ;;  %v320_v2 = vld [vmem:[#allocation10 + $0xa8] sm:$0xff] }
  0x7e   :  { %3120 = vmatpush3.bf16.msra.mxu1 %v3119_v24  ;;  %v3140_v62 = vpack.c.bf16 %v318_v61, %v317_v59  ;;  %v3143_v3 = vpack.c.bf16 %v320_v2, %v319_v63  ;;  %v321_v4 = vld [vmem:[#allocation10 + $0xb0] sm:$0xff]  ;;  %v322_v5 = vld [vmem:[#allocation10 + $0xb8] sm:$0xff]  ;;  %v323_v15 = vld [vmem:[#allocation10 + $0xc0] sm:$0xff] }
  0x7f   :  { %3121 = vmatprep.subr.bf16.mxu1 %v3864_v0  ;;  %v3146_v6 = vpack.c.bf16 %v322_v5, %v321_v4  ;;  %v2280_v7 = vld [vmem:[#allocation8] ss:$0 sm:$0xff]  ;;  %v324_v16 = vld [vmem:[#allocation10 + $0xc8] sm:$0xff]  ;;  %v325_v18 = vld [vmem:[#allocation10 + $0xd0] sm:$0xff] }
  0x80   :  { %3099 = vmatpush3.bf16.msra.mxu0 %v3098_v21  ;;  %v3149_v17 = vpack.c.bf16 %v324_v16, %v323_v15  ;;  %v326_v19 = vld [vmem:[#allocation10 + $0xd8] sm:$0xff]  ;;  %v327_v21 = vld [vmem:[#allocation10 + $0xe0] sm:$0xff]  ;;  %v328_v22 = vld [vmem:[#allocation10 + $0xe8] sm:$0xff] }
  0x81   :  { %3100 = vmatprep.subr.bf16.mxu0 %v3864_v0  ;;  %v3152_v20 = vpack.c.bf16 %v326_v19, %v325_v18  ;;  %v3155_v23 = vpack.c.bf16 %v328_v22, %v327_v21  ;;  %v329_v24 = vld [vmem:[#allocation10 + $0xf0] sm:$0xff]  ;;  %v330_v25 = vld [vmem:[#allocation10 + $0xf8] sm:$0xff]  ;;  %v413_v27 = vld [vmem:[#allocation11 + $0x8] sm:$0xff] }
  0x82   :  { %3123 = vmatpush3.bf16.msra.mxu1 %v3122_v31  ;;  %v3158_v26 = vpack.c.bf16 %v330_v25, %v329_v24  ;;  %v412_v29 = vld [vmem:[#allocation11] sm:$0xff]  ;;  %v414_v31 = vld [vmem:[#allocation11 + $0x10] sm:$0xff]  ;;  %v419_v34 = vld [vmem:[#allocation11 + $0x38] sm:$0xff] }
  0x83   :  { %3124 = vmatprep.subr.bf16.mxu1 %v3864_v0  ;;  %v3162_v35 = vpack.c.bf16 %v414_v31, %v412_v29  ;;  %v416_v39 = vld [vmem:[#allocation11 + $0x20] sm:$0xff]  ;;  %v418_v40 = vld [vmem:[#allocation11 + $0x30] sm:$0xff]  ;;  %v421_v41 = vld [vmem:[#allocation11 + $0x48] sm:$0xff] }
  0x84   :  { %3102 = vmatpush3.bf16.msra.mxu0 %v3101_v28  ;;  %v415_v28 = vld [vmem:[#allocation11 + $0x18] sm:$0xff]  ;;  %v420_v46 = vld [vmem:[#allocation11 + $0x40] sm:$0xff]  ;;  %v425_v48 = vld [vmem:[#allocation11 + $0x68] sm:$0xff] }
  0x85   :  { %3103 = vmatprep.subr.bf16.mxu0 %v3864_v0  ;;  %v3160_v30 = vpack.c.bf16 %v415_v28, %v413_v27  ;;  %v427_v49 = vld [vmem:[#allocation11 + $0x78] sm:$0xff]  ;;  %v424_v52 = vld [vmem:[#allocation11 + $0x60] sm:$0xff]  ;;  %v429_v54 = vld [vmem:[#allocation11 + $0x88] sm:$0xff] }
  0x86   :  { %3126 = vmatpush3.bf16.msra.mxu1 %v3125_v47  ;;  %v422_v47 = vld [vmem:[#allocation11 + $0x50] sm:$0xff]  ;;  %v3172_v51 = vpack.c.bf16 %v427_v49, %v425_v48  ;;  %v431_v55 = vld [vmem:[#allocation11 + $0x98] sm:$0xff]  ;;  %v2281_v58 = vld [vmem:[%s4368_s5] ss:$0 sm:$0xff] }
  0x87   :  { %3127 = vmatprep.subr.bf16.mxu1 %v3864_v0  ;;  %v3176_v57 = vpack.c.bf16 %v431_v55, %v429_v54  ;;  %v430_v4 = vld [vmem:[#allocation11 + $0x90] sm:$0xff]  ;;  %v436_v15 = vld [vmem:[#allocation11 + $0xc0] sm:$0xff]  ;;  %v441_v18 = vld [vmem:[#allocation11 + $0xe8] sm:$0xff] }
  0x88   :  { %3105 = vmatpush3.bf16.msra.mxu0 %v3104_v33  ;;  %v417_v33 = vld [vmem:[#allocation11 + $0x28] sm:$0xff]  ;;  %v443_v19 = vld [vmem:[#allocation11 + $0xf8] sm:$0xff]  ;;  %v440_v22 = vld [vmem:[#allocation11 + $0xe0] sm:$0xff] }
  0x89   :  { %3106 = vmatprep.subr.bf16.mxu0 %v3864_v0  ;;  %v3188_v21 = vpack.c.bf16 %v443_v19, %v441_v18  ;;  %v544_v25 = vld [vmem:[#allocation7 + $0x80] sm:$0xff]  ;;  %v546_v27 = vld [vmem:[#allocation7 + $0x90] sm:$0xff]  ;;  %v547_v29 = vld [vmem:[#allocation7 + $0x98] sm:$0xff] }
  0x8a   :  { %3129 = vmatpush3.bf16.msra.mxu1 %v3128_v50  ;;  %v3170_v50 = vpack.c.bf16 %v422_v47, %v420_v46  ;;  %v2283_v31 = vld [vmem:[%s4368_s5 + $0x1] ss:$0 sm:$0xff]  ;;  %v551_v46 = vld [vmem:[#allocation7 + $0xb8] sm:$0xff]  ;;  %v552_v48 = vld [vmem:[#allocation7 + $0xc0] sm:$0xff] }
  0x8b   :  { %3130 = vmatprep.subr.bf16.mxu1 %v3864_v0  ;;  %v553_v49 = vld [vmem:[#allocation7 + $0xc8] sm:$0xff]  ;;  %v556_v54 = vld [vmem:[#allocation7 + $0xe0] sm:$0xff] }
  0x8c   :  { %3108 = vmatpush3.bf16.msra.mxu0 %v3107_v37  ;;  %v3164_v37 = vpack.c.bf16 %v419_v34, %v417_v33  ;;  %v557_v55 = vld [vmem:[#allocation7 + $0xe8] sm:$0xff] }
  0x8d   :  { %3109 = vmatprep.subr.bf16.mxu0 %v3864_v0 }
  0x8e   :  { %3132 = vmatpush3.bf16.msra.mxu1 %v3131_v53  ;;  %v426_v53 = vld [vmem:[#allocation11 + $0x70] sm:$0xff] }
  0x8f   :  { %3133 = vmatprep.subr.bf16.mxu1 %v3864_v0 }
  0x90   :  { %3111 = vmatpush3.bf16.msra.mxu0 %v3110_v42  ;;  %v423_v42 = vld [vmem:[#allocation11 + $0x58] sm:$0xff] }
  0x91   :  { %3136 = vmatprep.subr.bf16.mxu0 %v3864_v0  ;;  %v3168_v45 = vpack.c.bf16 %v423_v42, %v421_v41  ;;  %v548_v41 = vld [vmem:[#allocation7 + $0xa0] sm:$0xff]  ;;  %v549_v42 = vld [vmem:[#allocation7 + $0xa8] sm:$0xff] }
  0x92   :  { %3135 = vmatpush3.bf16.msra.mxu1 %v3134_v56  ;;  %v3174_v56 = vpack.c.bf16 %v426_v53, %v424_v52  ;;  %v555_v52 = vld [vmem:[#allocation7 + $0xd8] sm:$0xff] }
  0x93   :  { %2596 = vmatmul.mubr.f32.vlgmr.msra.gmra.mrb[0].mxu0 %v121_v44  ;;  %3161 = vmatprep.subr.bf16.mxu1 %v3160_v30  ;;  %v3166_v44 = vpack.c.bf16 %v418_v40, %v416_v39  ;;  %v3196_v30 = vpack.c.bf16 %v547_v29, %v546_v27  ;;  %v650_v29 = vld [vmem:[#allocation10 + $0x140] sm:$0xff] }
  0x94   :  { %2665 = vmatprep.mubr.msk.f32.mxu0 %vm3865_vm0, %v3866_v1  ;;  %3138 = vmatpush3.bf16.msra.mxu0 %v3137_v60 }
  0x95   :  { %3139 = vmatprep.subr.bf16.mxu0 %v3864_v0 }
  0x98   :  { %3141 = vmatpush3.bf16.msra.mxu0 %v3140_v62 }
  0x99   :  { %3142 = vmatprep.subr.bf16.mxu0 %v3864_v0 }
  0x9c   :  { %3144 = vmatpush3.bf16.msra.mxu0 %v3143_v3  ;;  %v428_v3 = vld [vmem:[#allocation11 + $0x80] sm:$0xff] }
  0x9d   :  { %3145 = vmatprep.subr.bf16.mxu0 %v3864_v0  ;;  %v3178_v5 = vpack.c.bf16 %v430_v4, %v428_v3  ;;  %v646_v4 = vld [vmem:[#allocation10 + $0x120] sm:$0xff] }
  0xa0   :  { %3147 = vmatpush3.bf16.msra.mxu0 %v3146_v6  ;;  %v433_v6 = vld [vmem:[#allocation11 + $0xa8] sm:$0xff] }
  0xa1   :  { %3148 = vmatprep.subr.bf16.mxu0 %v3864_v0 }
  0xa4   :  { %3150 = vmatpush3.bf16.msra.mxu0 %v3149_v17  ;;  %v438_v17 = vld [vmem:[#allocation11 + $0xd0] sm:$0xff] }
  0xa5   :  { %3151 = vmatprep.subr.bf16.mxu0 %v3864_v0 }
  0xa8   :  { %3153 = vmatpush3.bf16.msra.mxu0 %v3152_v20  ;;  %v3186_v20 = vpack.c.bf16 %v438_v17, %v436_v15 }
  0xa9   :  { %3154 = vmatprep.subr.bf16.mxu0 %v3864_v0 }
  0xac   :  { %3156 = vmatpush3.bf16.msra.mxu0 %v3155_v23  ;;  %v442_v23 = vld [vmem:[#allocation11 + $0xf0] sm:$0xff] }
  0xad   :  { %3157 = vmatprep.subr.bf16.mxu0 %v3864_v0  ;;  %v3190_v24 = vpack.c.bf16 %v442_v23, %v440_v22 }
  0xb0   :  { %3159 = vmatpush3.bf16.msra.mxu0 %v3158_v26  ;;  %v545_v26 = vld [vmem:[#allocation7 + $0x88] sm:$0xff] }
  0xb1   :  { %3192 = vmatprep.subr.bf16.mxu0 %v3864_v0  ;;  %v3193_v28 = vpack.c.bf16 %v545_v26, %v544_v25 }
 0x166   :  { %v211_v8 = vpop.f32.mrb[0].mxu0 }
 0x167   :  { %v212_v9 = vadd.f32 %v2280_v7, %v211_v8  ;;  %v2597_v10 = vpop.f32.mrb[1].mxu0  ;;  %v435_v7 = vld [vmem:[#allocation11 + $0xb8] sm:$0xff] }
 0x168   :  { %v3180_v8 = vpack.c.bf16 %v435_v7, %v433_v6  ;;  %v434_v10 = vld [vmem:[#allocation11 + $0xb0] sm:$0xff] }
 0x169   :  { %3624 = vtanh.f32 %v212_v9  ;;  %v216_v12 = vmax.f32 %v212_v9, 0.0  ;;  %v432_v9 = vld [vmem:[#allocation11 + $0xa0] sm:$0xff]  ;;  %v648_v7 = vld [vmem:[#allocation10 + $0x130] sm:$0xff] }
 0x173   :  { %v3625_v13 = vpop.eup %3624 }
 0x174   :  { %v217_v14 = vsel %vm115_vm1, %v3625_v13, %v216_v12  ;;  %v3182_v12 = vpack.c.bf16 %v434_v10, %v432_v9  ;;  %v437_v13 = vld [vmem:[#allocation11 + $0xc8] sm:$0xff] }
 0x175   :  { %2631 = vmatmul.mubr.f32.vlgmr.msra.gmra.mrb[0].mxu1 %v217_v14  ;;  %v439_v14 = vld [vmem:[#allocation11 + $0xd8] sm:$0xff]  ;;  %v444_v10 = vld [vmem:[%s4370_s7] sm:$0x3] }
 0x176   :  { %520 = vmatprep.mubr.f32.mxu1 %v3866_v1  ;;  %3163 = vmatpush1.bf16.msra.mxu1 %v3162_v35  ;;  %v3184_v16 = vpack.c.bf16 %v439_v14, %v437_v13  ;;  %v449_v13 = vrot.slane %v444_v10, %v4034_v36 }
 0x177   :  { %3165 = vmatprep.subr.bf16.mxu1 %v3164_v37 }
 0x17a   :  { %3167 = vmatpush1.bf16.msra.mxu1 %v3166_v44  ;;  %v3199_v44 = vpack.c.bf16 %v549_v42, %v548_v41  ;;  %v657_v41 = vld [vmem:[#allocation10 + $0x178] sm:$0xff] }
 0x17b   :  { %3169 = vmatprep.subr.bf16.mxu1 %v3168_v45  ;;  %v550_v45 = vld [vmem:[#allocation7 + $0xb0] sm:$0xff] }
 0x17c   :  { %v3202_v47 = vpack.c.bf16 %v551_v46, %v550_v45  ;;  %v741_v45 = vld [vmem:[#allocation10 + $0x188] sm:$0xff]  ;;  %v742_v46 = vld [vmem:[#allocation10 + $0x190] sm:$0xff] }
 0x17e   :  { %3171 = vmatpush1.bf16.msra.mxu1 %v3170_v50  ;;  %v3205_v50 = vpack.c.bf16 %v553_v49, %v552_v48  ;;  %v743_v48 = vld [vmem:[#allocation10 + $0x198] sm:$0xff] }
 0x17f   :  { %3173 = vmatprep.subr.bf16.mxu1 %v3172_v51  ;;  %v554_v51 = vld [vmem:[#allocation7 + $0xd0] sm:$0xff]  ;;  %v3244_v49 = vpack.c.bf16 %v743_v48, %v742_v46 }
 0x180   :  { %v3208_v53 = vpack.c.bf16 %v555_v52, %v554_v51  ;;  %v745_v51 = vld [vmem:[#allocation10 + $0x1a8] sm:$0xff] }
 0x181   :  { %v2286_v48 = vld [vmem:[%s4368_s5 + $0x2] ss:$0 sm:$0xff] }
 0x182   :  { %3175 = vmatpush1.bf16.msra.mxu1 %v3174_v56  ;;  %v3211_v56 = vpack.c.bf16 %v557_v55, %v556_v54  ;;  %v747_v54 = vld [vmem:[#allocation10 + $0x1b8] sm:$0xff] }
 0x183   :  { %3177 = vmatprep.subr.bf16.mxu1 %v3176_v57  ;;  %v558_v57 = vld [vmem:[#allocation7 + $0xf0] sm:$0xff] }
 0x186   :  { %3179 = vmatpush1.bf16.msra.mxu1 %v3178_v5  ;;  %v647_v5 = vld [vmem:[#allocation10 + $0x128] sm:$0xff] }
 0x187   :  { %3181 = vmatprep.subr.bf16.mxu1 %v3180_v8  ;;  %v3223_v6 = vpack.c.bf16 %v647_v5, %v646_v4  ;;  %v649_v8 = vld [vmem:[#allocation10 + $0x138] sm:$0xff]  ;;  %v750_v4 = vld [vmem:[#allocation10 + $0x1d0] sm:$0xff] }
 0x188   :  { %v3226_v9 = vpack.c.bf16 %v649_v8, %v648_v7  ;;  %v751_v5 = vld [vmem:[#allocation10 + $0x1d8] sm:$0xff]  ;;  %v752_v7 = vld [vmem:[#allocation10 + $0x1e0] sm:$0xff]  ;;  %v753_v8 = vld [vmem:[#allocation10 + $0x1e8] sm:$0xff] }
 0x18a   :  { %3183 = vmatpush1.bf16.msra.mxu1 %v3182_v12  ;;  %v4098_v12 = vsub.f32 1.0, %v4037_v38 }
 0x18b   :  { %3185 = vmatprep.subr.bf16.mxu1 %v3184_v16 }
 0x18c   :  { %v530_v14 = vrot.slane %v4098_v12, %v4034_v36 }
 0x18e   :  { %3187 = vmatpush1.bf16.msra.mxu1 %v3186_v20  ;;  %v4107_v20 = vsub.s32 1, %v4029_v32 }
 0x18f   :  { %3189 = vmatprep.subr.bf16.mxu1 %v3188_v21 }
 0x190   :  { %v453_v21 = vrot.slane %v444_v10, %v4107_v20  ;;  %v541_v26 = vrot.slane %v4037_v38, %v4107_v20  ;;  %v754_v10 = vld [vmem:[#allocation10 + $0x1f0] sm:$0xff] }
 0x192   :  { %3191 = vmatpush1.bf16.msra.mxu1 %v3190_v24 }
 0x193   :  { %3216 = vmatprep.subr.bf16.mxu1 %v3864_v0 }
 0x248   :  { %v307_v59 = vpop.f32.mrb[0].mxu1 }
 0x249   :  { %v308_v60 = vadd.f32 %v2281_v58, %v307_v59  ;;  %v2632_v61 = vpop.f32.mrb[1].mxu1  ;;  %v559_v58 = vld [vmem:[#allocation7 + $0xf8] sm:$0xff] }
 0x24a   :  { %v3214_v59 = vpack.c.bf16 %v559_v58, %v558_v57  ;;  %v643_v61 = vld [vmem:[#allocation10 + $0x108] sm:$0xff] }
 0x24b   :  { %3626 = vtanh.f32 %v308_v60  ;;  %v312_v62 = vmax.f32 %v308_v60, 0.0  ;;  %v642_v60 = vld [vmem:[#allocation10 + $0x100] sm:$0xff] }
 0x255   :  { %v3627_v63 = vpop.eup %3626 }
 0x256   :  { %v313_v2 = vsel %vm115_vm1, %v3627_v63, %v312_v62  ;;  %v644_v62 = vld [vmem:[#allocation10 + $0x110] sm:$0xff]  ;;  %v3217_v63 = vpack.c.bf16 %v643_v61, %v642_v60 }
 0x257   :  { %2666 = vmatmul.mubr.f32.vlgmr.msra.gmra.mrb[2].mxu0 %v313_v2  ;;  %v645_v2 = vld [vmem:[#allocation10 + $0x118] sm:$0xff] }
 0x258   :  { %2700 = vmatprep.mubr.msk.f32.mxu0 %vm3865_vm0, %v3866_v1  ;;  %3194 = vmatpush3.bf16.msra.mxu0 %v3193_v28  ;;  %v3220_v3 = vpack.c.bf16 %v645_v2, %v644_v62  ;;  %v749_v2 = vld [vmem:[#allocation10 + $0x1c8] sm:$0xff] }
 0x259   :  { %3195 = vmatprep.subr.bf16.mxu0 %v3864_v0 }
 0x25c   :  { %3197 = vmatpush3.bf16.msra.mxu0 %v3196_v30  ;;  %v651_v30 = vld [vmem:[#allocation10 + $0x148] sm:$0xff] }
 0x25d   :  { %3198 = vmatprep.subr.bf16.mxu0 %v3864_v0 }
 0x260   :  { %3200 = vmatpush3.bf16.msra.mxu0 %v3199_v44  ;;  %v740_v44 = vld [vmem:[#allocation10 + $0x180] sm:$0xff] }
 0x261   :  { %3201 = vmatprep.subr.bf16.mxu0 %v3864_v0 }
 0x264   :  { %3203 = vmatpush3.bf16.msra.mxu0 %v3202_v47  ;;  %v3241_v47 = vpack.c.bf16 %v741_v45, %v740_v44  ;;  %v855_v44 = vld [vmem:[#allocation11 + $0x188] sm:$0xff]  ;;  %v857_v45 = vld [vmem:[#allocation11 + $0x198] sm:$0xff] }
 0x265   :  { %3204 = vmatprep.subr.bf16.mxu0 %v3864_v0 }
 0x268   :  { %3206 = vmatpush3.bf16.msra.mxu0 %v3205_v50  ;;  %v744_v50 = vld [vmem:[#allocation10 + $0x1a0] sm:$0xff] }
 0x269   :  { %3207 = vmatprep.subr.bf16.mxu0 %v3864_v0  ;;  %v3247_v52 = vpack.c.bf16 %v745_v51, %v744_v50 }
 0x26c   :  { %3209 = vmatpush3.bf16.msra.mxu0 %v3208_v53  ;;  %v746_v53 = vld [vmem:[#allocation10 + $0x1b0] sm:$0xff] }
 0x26d   :  { %3210 = vmatprep.subr.bf16.mxu0 %v3864_v0  ;;  %v3250_v55 = vpack.c.bf16 %v747_v54, %v746_v53 }
 0x270   :  { %3212 = vmatpush3.bf16.msra.mxu0 %v3211_v56  ;;  %v2284_v56 = vld [vmem:[#allocation8 + $0x1] ss:$0 sm:$0xff] }
 0x271   :  { %3213 = vmatprep.subr.bf16.mxu0 %v3864_v0 }
 0x274   :  { %3215 = vmatpush3.bf16.msra.mxu0 %v3214_v59 }
 0x275   :  { %3240 = vmatprep.subr.bf16.mxu0 %v3864_v0 }
 0x32a   :  { %v405_v33 = vpop.f32.mrb[2].mxu0 }
 0x32b   :  { %v406_v34 = vadd.f32 %v2283_v31, %v405_v33  ;;  %v2667_v35 = vpop.f32.mrb[3].mxu0  ;;  %v3229_v31 = vpack.c.bf16 %v651_v30, %v650_v29  ;;  %v652_v33 = vld [vmem:[#allocation10 + $0x150] sm:$0xff]  ;;  %v847_v29 = vld [vmem:[#allocation11 + $0x148] sm:$0xff]  ;;  %v849_v30 = vld [vmem:[#allocation11 + $0x158] sm:$0xff] }
 0x32c   :  { %v654_v35 = vld [vmem:[#allocation10 + $0x160] sm:$0xff] }
 0x32d   :  { %3628 = vtanh.f32 %v406_v34  ;;  %v410_v37 = vmax.f32 %v406_v34, 0.0  ;;  %v653_v34 = vld [vmem:[#allocation10 + $0x158] sm:$0xff] }
 0x337   :  { %v3629_v39 = vpop.eup %3628 }
 0x338   :  { %v411_v40 = vsel %vm115_vm1, %v3629_v39, %v410_v37  ;;  %v655_v37 = vld [vmem:[#allocation10 + $0x168] sm:$0xff] }
 0x339   :  { %521 = vmatmul.mubr.f32.vlgmr.msra.gmra.mrb[2].mxu1 %v411_v40  ;;  %v3235_v39 = vpack.c.bf16 %v655_v37, %v654_v35  ;;  %v656_v40 = vld [vmem:[#allocation10 + $0x170] sm:$0xff]  ;;  %v851_v35 = vld [vmem:[#allocation11 + $0x168] sm:$0xff]  ;;  %v853_v37 = vld [vmem:[#allocation11 + $0x178] sm:$0xff] }
 0x33a   :  { %2735 = vmatprep.mubr.msk.f32.mxu1 %vm3865_vm0, %v3866_v1  ;;  %3218 = vmatpush3.bf16.msra.mxu1 %v3217_v63  ;;  %v3238_v42 = vpack.c.bf16 %v657_v41, %v656_v40  ;;  %v748_v63 = vld [vmem:[#allocation10 + $0x1c0] sm:$0xff]  ;;  %v3276_v40 = vpack.c.bf16 %v853_v37, %v851_v35  ;;  %v977_v35 = vld [vmem:[#allocation7 + $0x130] sm:$0xff]  ;;  %v978_v37 = vld [vmem:[#allocation7 + $0x138] sm:$0xff] }
 0x33b   :  { %3219 = vmatprep.subr.bf16.mxu1 %v3864_v0  ;;  %v850_v41 = vld [vmem:[#allocation11 + $0x160] sm:$0xff] }
 0x33e   :  { %3221 = vmatpush3.bf16.msra.mxu1 %v3220_v3  ;;  %v3253_v3 = vpack.c.bf16 %v749_v2, %v748_v63  ;;  %v863_v2 = vld [vmem:[#allocation11 + $0x1c8] sm:$0xff] }
 0x33f   :  { %3222 = vmatprep.subr.bf16.mxu1 %v3864_v0 }
 0x342   :  { %3224 = vmatpush3.bf16.msra.mxu1 %v3223_v6  ;;  %v3256_v6 = vpack.c.bf16 %v751_v5, %v750_v4  ;;  %v862_v4 = vld [vmem:[#allocation11 + $0x1c0] sm:$0xff] }
 0x343   :  { %3225 = vmatprep.subr.bf16.mxu1 %v3864_v0 }
 0x346   :  { %3227 = vmatpush3.bf16.msra.mxu1 %v3226_v9  ;;  %v3259_v9 = vpack.c.bf16 %v753_v8, %v752_v7  ;;  %v867_v7 = vld [vmem:[#allocation11 + $0x1e8] sm:$0xff]  ;;  %v869_v8 = vld [vmem:[#allocation11 + $0x1f8] sm:$0xff] }
 0x347   :  { %3228 = vmatprep.subr.bf16.mxu1 %v3864_v0 }
 0x34a   :  { %3230 = vmatpush3.bf16.msra.mxu1 %v3229_v31 }
 0x34b   :  { %3231 = vmatprep.subr.bf16.mxu1 %v3864_v0 }
 0x40c   :  { %v522_v15 = vpop.f32.mrb[2].mxu1 }
 0x40d   :  { %v523_v16 = vadd.f32 %v522_v15, %v449_v13  ;;  %v524_v17 = vpop.f32.mrb[3].mxu1  ;;  %v755_v13 = vld [vmem:[#allocation10 + $0x1f8] sm:$0xff]  ;;  %v839_v15 = vld [vmem:[#allocation11 + $0x108] sm:$0xff] }
 0x40e   :  { %v525_v22 = vadd.f32 %v524_v17, %v453_v21  ;;  %v838_v17 = vld [vmem:[#allocation11 + $0x100] sm:$0xff]  ;;  %v840_v21 = vld [vmem:[#allocation11 + $0x110] sm:$0xff] }
 0x40f   :  { %v4103_v18 = vmul.f32 %v530_v14, %v523_v16  ;;  %v841_v16 = vld [vmem:[#allocation11 + $0x118] sm:$0xff] }
 0x410   :  { %v532_v24 = vmul.f32 %v530_v14, %v525_v22  ;;  %v3262_v14 = vpack.c.bf16 %v755_v13, %v754_v10  ;;  %v843_v22 = vld [vmem:[#allocation11 + $0x128] sm:$0xff]  ;;  %v3292_v10 = vpack.c.bf16 %v869_v8, %v867_v7  ;;  %v866_v13 = vld [vmem:[#allocation11 + $0x1e0] sm:$0xff] }
 0x411   :  { %v533_v19 = vmul.f32 1.442695, %v4103_v18 }
 0x413   :  { %3630 = vpow2.f32 %v533_v19  ;;  %v3264_v19 = vpack.c.bf16 %v841_v16, %v839_v15  ;;  %v971_v16 = vld [vmem:[#allocation7 + $0x100] sm:$0xff] }
 0x41d   :  { %v3631_v23 = vpop.eup %3630 }
 0x41e   :  { %v535_v25 = vmul.f32 %v3631_v23, %v4042_v43  ;;  %v3232_v43 = vpack.c.bf16 %v653_v34, %v652_v33  ;;  %v845_v23 = vld [vmem:[#allocation11 + $0x138] sm:$0xff]  ;;  %v3272_v33 = vpack.c.bf16 %v849_v30, %v847_v29  ;;  %v846_v34 = vld [vmem:[#allocation11 + $0x140] sm:$0xff] }
 0x420   :  { %v4113_v27 = vadd.f32 %v535_v25, %v532_v24  ;;  %3233 = vmatpush3.bf16.msra.mxu1 %v3232_v43  ;;  %v3266_v24 = vpack.c.bf16 %v840_v21, %v838_v17  ;;  %v3268_v25 = vpack.c.bf16 %v845_v23, %v843_v22  ;;  %v848_v43 = vld [vmem:[#allocation11 + $0x150] sm:$0xff]  ;;  %v972_v17 = vld [vmem:[#allocation7 + $0x108] sm:$0xff] }
 0x421   :  { %3234 = vmatprep.subr.bf16.mxu1 %v3864_v0  ;;  %v3297_v21 = vpack.c.bf16 %v972_v17, %v971_v16  ;;  %v974_v22 = vld [vmem:[#allocation7 + $0x118] sm:$0xff] }
 0x422   :  { %v542_v28 = vmul.f32 %v541_v26, %v4113_v27  ;;  %v842_v26 = vld [vmem:[#allocation11 + $0x120] sm:$0xff] }
 0x424   :  { %2701 = vmatmul.mubr.f32.vlgmr.msra.gmra.mrb[4].mxu0 %v542_v28  ;;  %3236 = vmatpush3.bf16.msra.mxu1 %v3235_v39  ;;  %v844_v28 = vld [vmem:[#allocation11 + $0x130] sm:$0xff]  ;;  %v3274_v39 = vpack.c.bf16 %v848_v43, %v846_v34  ;;  %v976_v34 = vld [vmem:[#allocation7 + $0x128] sm:$0xff] }
 0x425   :  { %2770 = vmatprep.mubr.msk.f32.mxu0 %vm3865_vm0, %v3866_v1  ;;  %3237 = vmatprep.subr.bf16.mxu1 %v3864_v0  ;;  %v3270_v31 = vpack.c.bf16 %v844_v28, %v842_v26 }
 0x426   :  { %3242 = vmatpush3.bf16.msra.mxu0 %v3241_v47  ;;  %v3280_v47 = vpack.c.bf16 %v857_v45, %v855_v44  ;;  %v981_v44 = vld [vmem:[#allocation7 + $0x150] sm:$0xff]  ;;  %v982_v45 = vld [vmem:[#allocation7 + $0x158] sm:$0xff] }
 0x427   :  { %3243 = vmatprep.subr.bf16.mxu0 %v3864_v0 }
 0x428   :  { %3239 = vmatpush3.bf16.msra.mxu1 %v3238_v42  ;;  %v852_v42 = vld [vmem:[#allocation11 + $0x170] sm:$0xff] }
 0x429   :  { %3265 = vmatprep.subr.bf16.mxu1 %v3264_v19  ;;  %v3278_v46 = vpack.c.bf16 %v852_v42, %v850_v41  ;;  %v973_v19 = vld [vmem:[#allocation7 + $0x110] sm:$0xff]  ;;  %v980_v41 = vld [vmem:[#allocation7 + $0x148] sm:$0xff] }
 0x42a   :  { %3245 = vmatpush3.bf16.msra.mxu0 %v3244_v49  ;;  %v3300_v23 = vpack.c.bf16 %v974_v22, %v973_v19 }
 0x42b   :  { %3246 = vmatprep.subr.bf16.mxu0 %v3864_v0 }
 0x42e   :  { %3248 = vmatpush3.bf16.msra.mxu0 %v3247_v52 }
 0x42f   :  { %3249 = vmatprep.subr.bf16.mxu0 %v3864_v0 }
 0x432   :  { %3251 = vmatpush3.bf16.msra.mxu0 %v3250_v55  ;;  %v854_v55 = vld [vmem:[#allocation11 + $0x180] sm:$0xff] }
 0x433   :  { %3252 = vmatprep.subr.bf16.mxu0 %v3864_v0 }
 0x436   :  { %3254 = vmatpush3.bf16.msra.mxu0 %v3253_v3  ;;  %v865_v3 = vld [vmem:[#allocation11 + $0x1d8] sm:$0xff] }
 0x437   :  { %3255 = vmatprep.subr.bf16.mxu0 %v3864_v0  ;;  %v3288_v5 = vpack.c.bf16 %v865_v3, %v863_v2  ;;  %v2289_v3 = vld [vmem:[%s4370_s7 + $0x2] sm:$0x3] }
 0x43a   :  { %3257 = vmatpush3.bf16.msra.mxu0 %v3256_v6  ;;  %v864_v6 = vld [vmem:[#allocation11 + $0x1d0] sm:$0xff] }
 0x43b   :  { %3258 = vmatprep.subr.bf16.mxu0 %v3864_v0 }
 0x43e   :  { %3260 = vmatpush3.bf16.msra.mxu0 %v3259_v9  ;;  %v3290_v9 = vpack.c.bf16 %v864_v6, %v862_v4  ;;  %v876_v4 = vrot.slane %v2289_v3, %v4034_v36 }
 0x43f   :  { %3261 = vmatprep.subr.bf16.mxu0 %v3864_v0 }
 0x442   :  { %3263 = vmatpush3.bf16.msra.mxu0 %v3262_v14  ;;  %v868_v14 = vld [vmem:[#allocation11 + $0x1f0] sm:$0xff] }
 0x443   :  { %3296 = vmatprep.subr.bf16.mxu0 %v3864_v0  ;;  %v3294_v15 = vpack.c.bf16 %v868_v14, %v866_v13  ;;  %v880_v13 = vrot.slane %v2289_v3, %v4107_v20 }
 0x4f7   :  { %v634_v57 = vpop.f32.mrb[4].mxu0 }
 0x4f8   :  { %v635_v58 = vadd.f32 %v2284_v56, %v634_v57  ;;  %v2702_v59 = vpop.f32.mrb[5].mxu0  ;;  %v856_v56 = vld [vmem:[#allocation11 + $0x190] sm:$0xff] }
 0x4f9   :  { %v3282_v57 = vpack.c.bf16 %v856_v56, %v854_v55  ;;  %v861_v59 = vld [vmem:[#allocation11 + $0x1b8] sm:$0xff]  ;;  %v1071_v55 = vld [vmem:[#allocation10 + $0x210] sm:$0xff] }
 0x4fa   :  { %3632 = vtanh.f32 %v635_v58  ;;  %v639_v60 = vmax.f32 %v635_v58, 0.0  ;;  %v859_v58 = vld [vmem:[#allocation11 + $0x1a8] sm:$0xff] }
 0x504   :  { %v3633_v61 = vpop.eup %3632 }
 0x505   :  { %v640_v62 = vsel %vm115_vm1, %v3633_v61, %v639_v60  ;;  %v3284_v60 = vpack.c.bf16 %v861_v59, %v859_v58  ;;  %v858_v61 = vld [vmem:[#allocation11 + $0x1a0] sm:$0xff] }
 0x506   :  { %2736 = vmatmul.mubr.f32.vlgmr.msra.gmra.mrb[4].mxu1 %v640_v62  ;;  %v860_v62 = vld [vmem:[#allocation11 + $0x1b0] sm:$0xff]  ;;  %v1073_v59 = vld [vmem:[#allocation10 + $0x220] sm:$0xff] }
 0x507   :  { %947 = vmatprep.mubr.f32.mxu1 %v3866_v1  ;;  %3267 = vmatpush1.bf16.msra.mxu1 %v3266_v24  ;;  %v3286_v63 = vpack.c.bf16 %v860_v62, %v858_v61  ;;  %v2288_v24 = vld [vmem:[%s4368_s5 + $0x3] ss:$0 sm:$0xff]  ;;  %v1075_v62 = vld [vmem:[#allocation10 + $0x230] sm:$0xff] }
 0x508   :  { %3269 = vmatprep.subr.bf16.mxu1 %v3268_v25 }
 0x50b   :  { %3271 = vmatpush1.bf16.msra.mxu1 %v3270_v31 }
 0x50c   :  { %3273 = vmatprep.subr.bf16.mxu1 %v3272_v33  ;;  %v975_v33 = vld [vmem:[#allocation7 + $0x120] sm:$0xff] }
 0x50d   :  { %v3303_v43 = vpack.c.bf16 %v976_v34, %v975_v33  ;;  %v1083_v33 = vld [vmem:[#allocation10 + $0x270] sm:$0xff]  ;;  %v1084_v34 = vld [vmem:[#allocation10 + $0x278] sm:$0xff] }
 0x50f   :  { %3275 = vmatpush1.bf16.msra.mxu1 %v3274_v39  ;;  %v3306_v39 = vpack.c.bf16 %v978_v37, %v977_v35  ;;  %v1167_v35 = vld [vmem:[#allocation10 + $0x280] sm:$0xff]  ;;  %v1168_v37 = vld [vmem:[#allocation10 + $0x288] sm:$0xff] }
 0x510   :  { %3277 = vmatprep.subr.bf16.mxu1 %v3276_v40  ;;  %v979_v40 = vld [vmem:[#allocation7 + $0x140] sm:$0xff] }
 0x511   :  { %v3309_v42 = vpack.c.bf16 %v980_v41, %v979_v40  ;;  %v3345_v40 = vpack.c.bf16 %v1168_v37, %v1167_v35  ;;  %v1170_v41 = vld [vmem:[#allocation10 + $0x298] sm:$0xff]  ;;  %v1279_v35 = vld [vmem:[#allocation11 + $0x270] sm:$0xff]  ;;  %v1282_v37 = vld [vmem:[#allocation11 + $0x288] sm:$0xff] }
 0x513   :  { %3279 = vmatpush1.bf16.msra.mxu1 %v3278_v46  ;;  %v3312_v46 = vpack.c.bf16 %v982_v45, %v981_v44  ;;  %v1171_v44 = vld [vmem:[#allocation10 + $0x2a0] sm:$0xff]  ;;  %v1172_v45 = vld [vmem:[#allocation10 + $0x2a8] sm:$0xff] }
 0x514   :  { %3281 = vmatprep.subr.bf16.mxu1 %v3280_v47  ;;  %v983_v47 = vld [vmem:[#allocation7 + $0x160] sm:$0xff] }
 0x517   :  { %3283 = vmatpush1.bf16.msra.mxu1 %v3282_v57  ;;  %v1072_v57 = vld [vmem:[#allocation10 + $0x218] sm:$0xff] }
 0x518   :  { %3285 = vmatprep.subr.bf16.mxu1 %v3284_v60  ;;  %v3324_v58 = vpack.c.bf16 %v1072_v57, %v1071_v55  ;;  %v1074_v60 = vld [vmem:[#allocation10 + $0x228] sm:$0xff]  ;;  %v1175_v57 = vld [vmem:[#allocation10 + $0x2c0] sm:$0xff] }
 0x519   :  { %v3327_v61 = vpack.c.bf16 %v1074_v60, %v1073_v59  ;;  %v1177_v60 = vld [vmem:[#allocation10 + $0x2d0] sm:$0xff] }
 0x51b   :  { %3287 = vmatpush1.bf16.msra.mxu1 %v3286_v63  ;;  %v1076_v63 = vld [vmem:[#allocation10 + $0x238] sm:$0xff] }
 0x51c   :  { %3289 = vmatprep.subr.bf16.mxu1 %v3288_v5  ;;  %v3330_v2 = vpack.c.bf16 %v1076_v63, %v1075_v62  ;;  %v957_v5 = vrot.slane %v4098_v12, %v4107_v20  ;;  %v1179_v63 = vld [vmem:[#allocation10 + $0x2e0] sm:$0xff] }
 0x51f   :  { %3291 = vmatpush1.bf16.msra.mxu1 %v3290_v9 }
 0x520   :  { %3293 = vmatprep.subr.bf16.mxu1 %v3292_v10 }
 0x523   :  { %3295 = vmatpush1.bf16.msra.mxu1 %v3294_v15  ;;  %v967_v15 = vsub.s32 2, %v4029_v32 }
 0x524   :  { %3320 = vmatprep.subr.bf16.mxu1 %v3864_v0 }
 0x5d9   :  { %v732_v49 = vpop.f32.mrb[4].mxu1 }
 0x5da   :  { %v733_v50 = vadd.f32 %v2286_v48, %v732_v49  ;;  %v2737_v51 = vpop.f32.mrb[5].mxu1  ;;  %v984_v48 = vld [vmem:[#allocation7 + $0x168] sm:$0xff] }
 0x5db   :  { %v3315_v49 = vpack.c.bf16 %v984_v48, %v983_v47  ;;  %v986_v51 = vld [vmem:[#allocation7 + $0x178] sm:$0xff] }
 0x5dc   :  { %3634 = vtanh.f32 %v733_v50  ;;  %v737_v52 = vmax.f32 %v733_v50, 0.0  ;;  %v985_v50 = vld [vmem:[#allocation7 + $0x170] sm:$0xff]  ;;  %v1174_v48 = vld [vmem:[#allocation10 + $0x2b8] sm:$0xff] }
 0x5dd   :  { %v1173_v47 = vld [vmem:[#allocation10 + $0x2b0] sm:$0xff] }
 0x5e6   :  { %v3635_v53 = vpop.eup %3634 }
 0x5e7   :  { %v738_v54 = vsel %vm115_vm1, %v3635_v53, %v737_v52  ;;  %v3318_v52 = vpack.c.bf16 %v986_v51, %v985_v50  ;;  %v1069_v53 = vld [vmem:[#allocation10 + $0x200] sm:$0xff]  ;;  %v2290_v50 = vld [vmem:[#allocation8 + $0x2] ss:$0 sm:$0xff] }
 0x5e8   :  { %2771 = vmatmul.mubr.f32.vlgmr.msra.gmra.mrb[6].mxu0 %v738_v54  ;;  %v1070_v54 = vld [vmem:[#allocation10 + $0x208] sm:$0xff] }
 0x5e9   :  { %2805 = vmatprep.mubr.msk.f32.mxu0 %vm3865_vm0, %v3866_v1  ;;  %3298 = vmatpush3.bf16.msra.mxu0 %v3297_v21  ;;  %v3321_v56 = vpack.c.bf16 %v1070_v54, %v1069_v53  ;;  %v968_v21 = vrot.slane %v4037_v38, %v967_v15 }
 0x5ea   :  { %3299 = vmatprep.subr.bf16.mxu0 %v3864_v0 }
 0x5ed   :  { %3301 = vmatpush3.bf16.msra.mxu0 %v3300_v23 }
 0x5ee   :  { %3302 = vmatprep.subr.bf16.mxu0 %v3864_v0 }
 0x5f1   :  { %3304 = vmatpush3.bf16.msra.mxu0 %v3303_v43  ;;  %v3342_v43 = vpack.c.bf16 %v1084_v34, %v1083_v33 }
 0x5f2   :  { %3305 = vmatprep.subr.bf16.mxu0 %v3864_v0 }
 0x5f5   :  { %3307 = vmatpush3.bf16.msra.mxu0 %v3306_v39  ;;  %v1169_v39 = vld [vmem:[#allocation10 + $0x290] sm:$0xff] }
 0x5f6   :  { %3308 = vmatprep.subr.bf16.mxu0 %v3864_v0 }
 0x5f9   :  { %3310 = vmatpush3.bf16.msra.mxu0 %v3309_v42  ;;  %v3348_v42 = vpack.c.bf16 %v1170_v41, %v1169_v39  ;;  %v1284_v39 = vld [vmem:[#allocation11 + $0x298] sm:$0xff] }
 0x5fa   :  { %3311 = vmatprep.subr.bf16.mxu0 %v3864_v0  ;;  %v3384_v41 = vpack.c.bf16 %v1284_v39, %v1282_v37  ;;  %v1408_v39 = vld [vmem:[#allocation7 + $0x1d0] sm:$0xff] }
 0x5fd   :  { %3313 = vmatpush3.bf16.msra.mxu0 %v3312_v46  ;;  %v3351_v46 = vpack.c.bf16 %v1172_v45, %v1171_v44 }
 0x5fe   :  { %3314 = vmatprep.subr.bf16.mxu0 %v3864_v0 }
 0x601   :  { %3316 = vmatpush3.bf16.msra.mxu0 %v3315_v49  ;;  %v3354_v49 = vpack.c.bf16 %v1174_v48, %v1173_v47 }
 0x602   :  { %3317 = vmatprep.subr.bf16.mxu0 %v3864_v0 }
 0x605   :  { %3319 = vmatpush3.bf16.msra.mxu0 %v3318_v52 }
 0x606   :  { %3344 = vmatprep.subr.bf16.mxu0 %v3864_v0 }
 0x6bb   :  { %v830_v25 = vpop.f32.mrb[6].mxu0 }
 0x6bc   :  { %v831_v26 = vadd.f32 %v2288_v24, %v830_v25  ;;  %v2772_v28 = vpop.f32.mrb[7].mxu0  ;;  %v1077_v24 = vld [vmem:[#allocation10 + $0x240] sm:$0xff]  ;;  %v1078_v25 = vld [vmem:[#allocation10 + $0x248] sm:$0xff] }
 0x6bd   :  { %v1079_v28 = vld [vmem:[#allocation10 + $0x250] sm:$0xff] }
 0x6be   :  { %3636 = vtanh.f32 %v831_v26  ;;  %v835_v29 = vmax.f32 %v831_v26, 0.0  ;;  %v3333_v26 = vpack.c.bf16 %v1078_v25, %v1077_v24  ;;  %v1271_v24 = vld [vmem:[#allocation11 + $0x230] sm:$0xff]  ;;  %v1274_v25 = vld [vmem:[#allocation11 + $0x248] sm:$0xff] }
 0x6c8   :  { %v3637_v30 = vpop.eup %3636 }
 0x6c9   :  { %v836_v31 = vsel %vm115_vm1, %v3637_v30, %v835_v29  ;;  %v1081_v30 = vld [vmem:[#allocation10 + $0x260] sm:$0xff] }
 0x6ca   :  { %948 = vmatmul.mubr.f32.vlgmr.msra.gmra.mrb[6].mxu1 %v836_v31  ;;  %v1082_v31 = vld [vmem:[#allocation10 + $0x268] sm:$0xff] }
 0x6cb   :  { %2840 = vmatprep.mubr.msk.f32.mxu1 %vm3865_vm0, %v3866_v1  ;;  %3322 = vmatpush3.bf16.msra.mxu1 %v3321_v56  ;;  %v3339_v38 = vpack.c.bf16 %v1082_v31, %v1081_v30  ;;  %v1275_v30 = vld [vmem:[#allocation11 + $0x250] sm:$0xff]  ;;  %v1278_v31 = vld [vmem:[#allocation11 + $0x268] sm:$0xff] }
 0x6cc   :  { %3323 = vmatprep.subr.bf16.mxu1 %v3864_v0 }
 0x6cf   :  { %3325 = vmatpush3.bf16.msra.mxu1 %v3324_v58  ;;  %v1176_v58 = vld [vmem:[#allocation10 + $0x2c8] sm:$0xff] }
 0x6d0   :  { %3326 = vmatprep.subr.bf16.mxu1 %v3864_v0  ;;  %v3357_v59 = vpack.c.bf16 %v1176_v58, %v1175_v57  ;;  %v1287_v57 = vld [vmem:[#allocation11 + $0x2b0] sm:$0xff] }
 0x6d3   :  { %3328 = vmatpush3.bf16.msra.mxu1 %v3327_v61  ;;  %v1178_v61 = vld [vmem:[#allocation10 + $0x2d8] sm:$0xff] }
 0x6d4   :  { %3329 = vmatprep.subr.bf16.mxu1 %v3864_v0  ;;  %v3360_v62 = vpack.c.bf16 %v1178_v61, %v1177_v60  ;;  %v1292_v60 = vld [vmem:[#allocation11 + $0x2d8] sm:$0xff]  ;;  %v1289_v61 = vld [vmem:[#allocation11 + $0x2c0] sm:$0xff] }
 0x6d7   :  { %3331 = vmatpush3.bf16.msra.mxu1 %v3330_v2  ;;  %v1180_v2 = vld [vmem:[#allocation10 + $0x2e8] sm:$0xff] }
 0x6d8   :  { %3332 = vmatprep.subr.bf16.mxu1 %v3864_v0  ;;  %v3363_v3 = vpack.c.bf16 %v1180_v2, %v1179_v63  ;;  %v1291_v63 = vld [vmem:[#allocation11 + $0x2d0] sm:$0xff]  ;;  %v1294_v2 = vld [vmem:[#allocation11 + $0x2e8] sm:$0xff] }
 0x6db   :  { %3334 = vmatpush3.bf16.msra.mxu1 %v3333_v26  ;;  %v1276_v26 = vld [vmem:[#allocation11 + $0x258] sm:$0xff] }
 0x6dc   :  { %3335 = vmatprep.subr.bf16.mxu1 %v3864_v0 }
 0x79d   :  { %v949_v6 = vpop.f32.mrb[6].mxu1 }
 0x79e   :  { %v950_v7 = vadd.f32 %v949_v6, %v876_v4  ;;  %v951_v8 = vpop.f32.mrb[7].mxu1  ;;  %v1181_v4 = vld [vmem:[#allocation10 + $0x2f0] sm:$0xff] }
 0x79f   :  { %v952_v14 = vadd.f32 %v951_v8, %v880_v13  ;;  %v1268_v8 = vld [vmem:[#allocation11 + $0x218] sm:$0xff] }
 0x7a0   :  { %v4165_v9 = vmul.f32 %v957_v5, %v950_v7  ;;  %v1266_v7 = vld [vmem:[#allocation11 + $0x208] sm:$0xff] }
 0x7a1   :  { %v959_v17 = vmul.f32 %v957_v5, %v952_v14  ;;  %v1182_v5 = vld [vmem:[#allocation10 + $0x2f8] sm:$0xff]  ;;  %v3368_v13 = vpack.c.bf16 %v1268_v8, %v1266_v7  ;;  %v1267_v14 = vld [vmem:[#allocation11 + $0x210] sm:$0xff] }
 0x7a2   :  { %v960_v10 = vmul.f32 1.442695, %v4165_v9  ;;  %v3366_v6 = vpack.c.bf16 %v1182_v5, %v1181_v4  ;;  %v3394_v4 = vpack.c.bf16 %v1291_v63, %v1289_v61  ;;  %v1295_v7 = vld [vmem:[#allocation11 + $0x2f0] sm:$0xff]  ;;  %v2295_v61 = vld [vmem:[%s4370_s7 + $0x4] sm:$0x3]  ;;  %v1384_v63 = vrot.slane %v4098_v12, %v967_v15 }
 0x7a4   :  { %3638 = vpow2.f32 %v960_v10  ;;  %v1265_v10 = vld [vmem:[#allocation11 + $0x200] sm:$0xff] }
 0x7ae   :  { %v3639_v16 = vpop.eup %3638 }
 0x7af   :  { %v962_v19 = vmul.f32 %v3639_v16, %v4113_v27  ;;  %v1080_v27 = vld [vmem:[#allocation10 + $0x258] sm:$0xff]  ;;  %v1270_v16 = vld [vmem:[#allocation11 + $0x228] sm:$0xff] }
 0x7b0   :  { %v3336_v29 = vpack.c.bf16 %v1080_v27, %v1079_v28  ;;  %v3376_v27 = vpack.c.bf16 %v1276_v26, %v1274_v25 }
 0x7b1   :  { %v4174_v22 = vadd.f32 %v962_v19, %v959_v17  ;;  %v1272_v17 = vld [vmem:[#allocation11 + $0x238] sm:$0xff]  ;;  %v3370_v19 = vpack.c.bf16 %v1267_v14, %v1265_v10  ;;  %v1400_v14 = vld [vmem:[#allocation7 + $0x190] sm:$0xff] }
 0x7b2   :  { %3337 = vmatpush3.bf16.msra.mxu1 %v3336_v29  ;;  %v1273_v29 = vld [vmem:[#allocation11 + $0x240] sm:$0xff] }
 0x7b3   :  { %v969_v23 = vmul.f32 %v968_v21, %v4174_v22  ;;  %3338 = vmatprep.subr.bf16.mxu1 %v3864_v0  ;;  %v3372_v21 = vpack.c.bf16 %v1272_v17, %v1270_v16  ;;  %v3378_v33 = vpack.c.bf16 %v1275_v30, %v1273_v29  ;;  %v1398_v10 = vld [vmem:[#allocation7 + $0x180] sm:$0xff]  ;;  %v1401_v17 = vld [vmem:[#allocation7 + $0x198] sm:$0xff]  ;;  %v1403_v30 = vld [vmem:[#allocation7 + $0x1a8] sm:$0xff] }
 0x7b4   :  { %v1402_v29 = vld [vmem:[#allocation7 + $0x1a0] sm:$0xff] }
 0x7b5   :  { %2806 = vmatmul.mubr.f32.vlgmr.msra.gmra.mrb[8].mxu0 %v969_v23  ;;  %v1269_v23 = vld [vmem:[#allocation11 + $0x220] sm:$0xff] }
 0x7b6   :  { %2875 = vmatprep.mubr.msk.f32.mxu0 %vm3865_vm0, %v3866_v1  ;;  %3340 = vmatpush3.bf16.msra.mxu1 %v3339_v38  ;;  %v3374_v28 = vpack.c.bf16 %v1271_v24, %v1269_v23  ;;  %v1280_v38 = vld [vmem:[#allocation11 + $0x278] sm:$0xff] }
 0x7b7   :  { %3341 = vmatprep.subr.bf16.mxu1 %v3864_v0  ;;  %3346 = vmatpush3.bf16.msra.mxu0 %v3345_v40  ;;  %v3380_v34 = vpack.c.bf16 %v1280_v38, %v1278_v31  ;;  %v3407_v31 = vpack.c.bf16 %v1403_v30, %v1402_v29  ;;  %v1404_v38 = vld [vmem:[#allocation7 + $0x1b0] sm:$0xff] }
 0x7b8   :  { %3347 = vmatprep.subr.bf16.mxu0 %v3864_v0  ;;  %v1509_v29 = vld [vmem:[#allocation10 + $0x368] sm:$0xff] }
 0x7ba   :  { %3343 = vmatpush3.bf16.msra.mxu1 %v3342_v43  ;;  %v1277_v43 = vld [vmem:[#allocation11 + $0x260] sm:$0xff] }
 0x7bb   :  { %3349 = vmatpush3.bf16.msra.mxu0 %v3348_v42  ;;  %3369 = vmatprep.subr.bf16.mxu1 %v3368_v13  ;;  %v3382_v40 = vpack.c.bf16 %v1279_v35, %v1277_v43  ;;  %v2292_v42 = vld [vmem:[%s4368_s5 + $0x4] ss:$0 sm:$0xff]  ;;  %v1399_v13 = vld [vmem:[#allocation7 + $0x188] sm:$0xff]  ;;  %v1406_v43 = vld [vmem:[#allocation7 + $0x1c0] sm:$0xff] }
 0x7bc   :  { %3350 = vmatprep.subr.bf16.mxu0 %v3864_v0  ;;  %v3401_v16 = vpack.c.bf16 %v1399_v13, %v1398_v10  ;;  %v1407_v35 = vld [vmem:[#allocation7 + $0x1c8] sm:$0xff]  ;;  %v1307_v10 = vrot.slane %v2295_v61, %v4107_v20 }
 0x7bd   :  { %v3413_v37 = vpack.c.bf16 %v1407_v35, %v1406_v43  ;;  %v1595_v43 = vld [vmem:[#allocation10 + $0x388] sm:$0xff]  ;;  %v1596_v35 = vld [vmem:[#allocation10 + $0x390] sm:$0xff] }
 0x7bf   :  { %3352 = vmatpush3.bf16.msra.mxu0 %v3351_v46 }
 0x7c0   :  { %3353 = vmatprep.subr.bf16.mxu0 %v3864_v0 }
 0x7c3   :  { %3355 = vmatpush3.bf16.msra.mxu0 %v3354_v49 }
 0x7c4   :  { %3356 = vmatprep.subr.bf16.mxu0 %v3864_v0 }
 0x7c7   :  { %3358 = vmatpush3.bf16.msra.mxu0 %v3357_v59  ;;  %v1290_v59 = vld [vmem:[#allocation11 + $0x2c8] sm:$0xff] }
 0x7c8   :  { %3359 = vmatprep.subr.bf16.mxu0 %v3864_v0 }
 0x7cb   :  { %3361 = vmatpush3.bf16.msra.mxu0 %v3360_v62  ;;  %v3392_v62 = vpack.c.bf16 %v1292_v60, %v1290_v59  ;;  %v1503_v59 = vld [vmem:[#allocation10 + $0x338] sm:$0xff] }
 0x7cc   :  { %3362 = vmatprep.subr.bf16.mxu0 %v3864_v0 }
 0x7cf   :  { %3364 = vmatpush3.bf16.msra.mxu0 %v3363_v3  ;;  %v1296_v3 = vld [vmem:[#allocation11 + $0x2f8] sm:$0xff] }
 0x7d0   :  { %3365 = vmatprep.subr.bf16.mxu0 %v3864_v0  ;;  %v3396_v5 = vpack.c.bf16 %v1296_v3, %v1294_v2 }
 0x7d3   :  { %3367 = vmatpush3.bf16.msra.mxu0 %v3366_v6  ;;  %v1293_v6 = vld [vmem:[#allocation11 + $0x2e0] sm:$0xff] }
 0x7d4   :  { %3400 = vmatprep.subr.bf16.mxu0 %v3864_v0  ;;  %v3398_v8 = vpack.c.bf16 %v1295_v7, %v1293_v6 }
 0x888   :  { %v1061_v51 = vpop.f32.mrb[8].mxu0 }
 0x889   :  { %v1062_v52 = vadd.f32 %v2290_v50, %v1061_v51  ;;  %v2807_v53 = vpop.f32.mrb[9].mxu0  ;;  %v1281_v50 = vld [vmem:[#allocation11 + $0x280] sm:$0xff]  ;;  %v1283_v51 = vld [vmem:[#allocation11 + $0x290] sm:$0xff] }
 0x88a   :  { %v1286_v53 = vld [vmem:[#allocation11 + $0x2a8] sm:$0xff] }
 0x88b   :  { %3640 = vtanh.f32 %v1062_v52  ;;  %v1066_v54 = vmax.f32 %v1062_v52, 0.0  ;;  %v3386_v52 = vpack.c.bf16 %v1283_v51, %v1281_v50  ;;  %v1497_v50 = vld [vmem:[#allocation10 + $0x308] sm:$0xff]  ;;  %v1498_v51 = vld [vmem:[#allocation10 + $0x310] sm:$0xff] }
 0x895   :  { %v3641_v55 = vpop.eup %3640 }
 0x896   :  { %v1067_v56 = vsel %vm115_vm1, %v3641_v55, %v1066_v54  ;;  %v1288_v54 = vld [vmem:[#allocation11 + $0x2b8] sm:$0xff] }
 0x897   :  { %2841 = vmatmul.mubr.f32.vlgmr.msra.gmra.mrb[8].mxu1 %v1067_v56  ;;  %v3388_v55 = vpack.c.bf16 %v1288_v54, %v1286_v53  ;;  %v1285_v56 = vld [vmem:[#allocation11 + $0x2a0] sm:$0xff]  ;;  %v1499_v53 = vld [vmem:[#allocation10 + $0x318] sm:$0xff] }
 0x898   :  { %1374 = vmatprep.mubr.f32.mxu1 %v3866_v1  ;;  %3371 = vmatpush1.bf16.msra.mxu1 %v3370_v19  ;;  %v3390_v58 = vpack.c.bf16 %v1287_v57, %v1285_v56  ;;  %v3404_v19 = vpack.c.bf16 %v1401_v17, %v1400_v14  ;;  %v3428_v54 = vpack.c.bf16 %v1499_v53, %v1498_v51  ;;  %v1501_v56 = vld [vmem:[#allocation10 + $0x328] sm:$0xff]  ;;  %v1394_v14 = vsub.s32 3, %v4029_v32 }
 0x899   :  { %3373 = vmatprep.subr.bf16.mxu1 %v3372_v21  ;;  %v2294_v21 = vld [vmem:[%s4368_s5 + $0x5] ss:$0 sm:$0xff] }
 0x89c   :  { %3375 = vmatpush1.bf16.msra.mxu1 %v3374_v28 }
 0x89d   :  { %3377 = vmatprep.subr.bf16.mxu1 %v3376_v27 }
 0x8a0   :  { %3379 = vmatpush1.bf16.msra.mxu1 %v3378_v33  ;;  %v1405_v33 = vld [vmem:[#allocation7 + $0x1b8] sm:$0xff] }
 0x8a1   :  { %3381 = vmatprep.subr.bf16.mxu1 %v3380_v34  ;;  %v3410_v34 = vpack.c.bf16 %v1405_v33, %v1404_v38  ;;  %v1511_v38 = vld [vmem:[#allocation10 + $0x378] sm:$0xff] }
 0x8a4   :  { %3383 = vmatpush1.bf16.msra.mxu1 %v3382_v40  ;;  %v1409_v40 = vld [vmem:[#allocation7 + $0x1d8] sm:$0xff] }
 0x8a5   :  { %3385 = vmatprep.subr.bf16.mxu1 %v3384_v41  ;;  %v3416_v41 = vpack.c.bf16 %v1409_v40, %v1408_v39  ;;  %v1597_v39 = vld [vmem:[#allocation10 + $0x398] sm:$0xff] }
 0x8a6   :  { %v3452_v40 = vpack.c.bf16 %v1597_v39, %v1596_v35  ;;  %v1711_v35 = vld [vmem:[#allocation11 + $0x398] sm:$0xff] }
 0x8a8   :  { %3387 = vmatpush1.bf16.msra.mxu1 %v3386_v52 }
 0x8a9   :  { %3389 = vmatprep.subr.bf16.mxu1 %v3388_v55  ;;  %v1500_v55 = vld [vmem:[#allocation10 + $0x320] sm:$0xff] }
 0x8aa   :  { %v3431_v57 = vpack.c.bf16 %v1501_v56, %v1500_v55  ;;  %v1602_v55 = vld [vmem:[#allocation10 + $0x3c0] sm:$0xff]  ;;  %v1603_v56 = vld [vmem:[#allocation10 + $0x3c8] sm:$0xff] }
 0x8ac   :  { %3391 = vmatpush1.bf16.msra.mxu1 %v3390_v58  ;;  %v1502_v58 = vld [vmem:[#allocation10 + $0x330] sm:$0xff] }
 0x8ad   :  { %3393 = vmatprep.subr.bf16.mxu1 %v3392_v62  ;;  %v3434_v60 = vpack.c.bf16 %v1503_v59, %v1502_v58  ;;  %v1303_v62 = vrot.slane %v2295_v61, %v4034_v36  ;;  %v1604_v58 = vld [vmem:[#allocation10 + $0x3d0] sm:$0xff]  ;;  %v1605_v59 = vld [vmem:[#allocation10 + $0x3d8] sm:$0xff]  ;;  %v1606_v61 = vld [vmem:[#allocation10 + $0x3e0] sm:$0xff] }
 0x8b0   :  { %3395 = vmatpush1.bf16.msra.mxu1 %v3394_v4 }
 0x8b1   :  { %3397 = vmatprep.subr.bf16.mxu1 %v3396_v5  ;;  %v964_v5 = vadd.f32 %v4165_v9, %v4103_v18 }
 0x8b4   :  { %3399 = vmatpush1.bf16.msra.mxu1 %v3398_v8 }
 0x8b5   :  { %3424 = vmatprep.subr.bf16.mxu1 %v3864_v0 }
 0x96a   :  { %v1159_v44 = vpop.f32.mrb[8].mxu1 }
 0x96b   :  { %v1160_v45 = vadd.f32 %v2292_v42, %v1159_v44  ;;  %v2842_v46 = vpop.f32.mrb[9].mxu1  ;;  %v1410_v42 = vld [vmem:[#allocation7 + $0x1e0] sm:$0xff]  ;;  %v1411_v44 = vld [vmem:[#allocation7 + $0x1e8] sm:$0xff] }
 0x96c   :  { %v1412_v46 = vld [vmem:[#allocation7 + $0x1f0] sm:$0xff] }
 0x96d   :  { %3642 = vtanh.f32 %v1160_v45  ;;  %v1164_v47 = vmax.f32 %v1160_v45, 0.0  ;;  %v3419_v45 = vpack.c.bf16 %v1411_v44, %v1410_v42  ;;  %v1599_v42 = vld [vmem:[#allocation10 + $0x3a8] sm:$0xff] }
 0x977   :  { %v3643_v48 = vpop.eup %3642 }
 0x978   :  { %v1165_v49 = vsel %vm115_vm1, %v3643_v48, %v1164_v47  ;;  %v1413_v47 = vld [vmem:[#allocation7 + $0x1f8] sm:$0xff] }
 0x979   :  { %2876 = vmatmul.mubr.f32.vlgmr.msra.gmra.mrb[10].mxu0 %v1165_v49  ;;  %v3422_v48 = vpack.c.bf16 %v1413_v47, %v1412_v46  ;;  %v1496_v49 = vld [vmem:[#allocation10 + $0x300] sm:$0xff]  ;;  %v1601_v46 = vld [vmem:[#allocation10 + $0x3b8] sm:$0xff] }
 0x97a   :  { %2910 = vmatprep.mubr.msk.f32.mxu0 %vm3865_vm0, %v3866_v1  ;;  %3402 = vmatpush3.bf16.msra.mxu0 %v3401_v16  ;;  %v3425_v52 = vpack.c.bf16 %v1497_v50, %v1496_v49 }
 0x97b   :  { %3403 = vmatprep.subr.bf16.mxu0 %v3864_v0 }
 0x97e   :  { %3405 = vmatpush3.bf16.msra.mxu0 %v3404_v19  ;;  %v4234_v19 = vld [vmem:[#allocation5] sm:$0x1f] }
 0x97f   :  { %3406 = vmatprep.subr.bf16.mxu0 %v3864_v0  ;;  %v1395_v18 = vrot.slane %v4234_v19, %v1394_v14 }
 0x982   :  { %3408 = vmatpush3.bf16.msra.mxu0 %v3407_v31  ;;  %v1510_v31 = vld [vmem:[#allocation10 + $0x370] sm:$0xff] }
 0x983   :  { %3409 = vmatprep.subr.bf16.mxu0 %v3864_v0  ;;  %v3446_v33 = vpack.c.bf16 %v1511_v38, %v1510_v31 }
 0x986   :  { %3411 = vmatpush3.bf16.msra.mxu0 %v3410_v34  ;;  %v1594_v34 = vld [vmem:[#allocation10 + $0x380] sm:$0xff] }
 0x987   :  { %3412 = vmatprep.subr.bf16.mxu0 %v3864_v0 }
 0x98a   :  { %3414 = vmatpush3.bf16.msra.mxu0 %v3413_v37  ;;  %v3449_v37 = vpack.c.bf16 %v1595_v43, %v1594_v34  ;;  %v1706_v34 = vld [vmem:[#allocation11 + $0x370] sm:$0xff]  ;;  %v1709_v43 = vld [vmem:[#allocation11 + $0x388] sm:$0xff] }
 0x98b   :  { %3415 = vmatprep.subr.bf16.mxu0 %v3864_v0  ;;  %v3488_v39 = vpack.c.bf16 %v1711_v35, %v1709_v43  ;;  %v1835_v35 = vld [vmem:[#allocation7 + $0x250] sm:$0xff] }
 0x98e   :  { %3417 = vmatpush3.bf16.msra.mxu0 %v3416_v41  ;;  %v1598_v41 = vld [vmem:[#allocation10 + $0x3a0] sm:$0xff] }
 0x98f   :  { %3418 = vmatprep.subr.bf16.mxu0 %v3864_v0  ;;  %v3455_v44 = vpack.c.bf16 %v1599_v42, %v1598_v41 }
 0x992   :  { %3420 = vmatpush3.bf16.msra.mxu0 %v3419_v45  ;;  %v1600_v45 = vld [vmem:[#allocation10 + $0x3b0] sm:$0xff] }
 0x993   :  { %3421 = vmatprep.subr.bf16.mxu0 %v3864_v0  ;;  %v3458_v47 = vpack.c.bf16 %v1601_v46, %v1600_v45 }
 0x996   :  { %3423 = vmatpush3.bf16.msra.mxu0 %v3422_v48  ;;  %v2296_v48 = vld [vmem:[#allocation8 + $0x3] ss:$0 sm:$0xff] }
 0x997   :  { %3448 = vmatprep.subr.bf16.mxu0 %v3864_v0 }
 0xa4c   :  { %v1257_v23 = vpop.f32.mrb[10].mxu0 }
 0xa4d   :  { %v1258_v24 = vadd.f32 %v2294_v21, %v1257_v23  ;;  %v2877_v25 = vpop.f32.mrb[11].mxu0  ;;  %v1504_v23 = vld [vmem:[#allocation10 + $0x340] sm:$0xff] }
 0xa4f   :  { %3644 = vtanh.f32 %v1258_v24  ;;  %v1262_v26 = vmax.f32 %v1258_v24, 0.0  ;;  %v1505_v24 = vld [vmem:[#allocation10 + $0x348] sm:$0xff] }
 0xa50   :  { %v3437_v25 = vpack.c.bf16 %v1505_v24, %v1504_v23  ;;  %v1698_v23 = vld [vmem:[#allocation11 + $0x330] sm:$0xff]  ;;  %v1701_v24 = vld [vmem:[#allocation11 + $0x348] sm:$0xff] }
 0xa59   :  { %v3645_v28 = vpop.eup %3644 }
 0xa5a   :  { %v1263_v27 = vsel %vm115_vm1, %v3645_v28, %v1262_v26  ;;  %v1507_v26 = vld [vmem:[#allocation10 + $0x358] sm:$0xff] }
 0xa5b   :  { %1375 = vmatmul.mubr.f32.vlgmr.msra.gmra.mrb[10].mxu1 %v1263_v27  ;;  %v1508_v27 = vld [vmem:[#allocation10 + $0x360] sm:$0xff] }
 0xa5c   :  { %2945 = vmatprep.mubr.msk.f32.mxu1 %vm3865_vm0, %v3866_v1  ;;  %3426 = vmatpush3.bf16.msra.mxu1 %v3425_v52  ;;  %v3443_v30 = vpack.c.bf16 %v1509_v29, %v1508_v27  ;;  %v1702_v27 = vld [vmem:[#allocation11 + $0x350] sm:$0xff]  ;;  %v1705_v29 = vld [vmem:[#allocation11 + $0x368] sm:$0xff] }
 0xa5d   :  { %3427 = vmatprep.subr.bf16.mxu1 %v3864_v0 }
 0xa60   :  { %3429 = vmatpush3.bf16.msra.mxu1 %v3428_v54 }
 0xa61   :  { %3430 = vmatprep.subr.bf16.mxu1 %v3864_v0 }
 0xa64   :  { %3432 = vmatpush3.bf16.msra.mxu1 %v3431_v57  ;;  %v3461_v57 = vpack.c.bf16 %v1603_v56, %v1602_v55  ;;  %v1714_v55 = vld [vmem:[#allocation11 + $0x3b0] sm:$0xff] }
 0xa65   :  { %3433 = vmatprep.subr.bf16.mxu1 %v3864_v0 }
 0xa68   :  { %3435 = vmatpush3.bf16.msra.mxu1 %v3434_v60  ;;  %v3464_v60 = vpack.c.bf16 %v1605_v59, %v1604_v58  ;;  %v1719_v58 = vld [vmem:[#allocation11 + $0x3d8] sm:$0xff]  ;;  %v1716_v59 = vld [vmem:[#allocation11 + $0x3c0] sm:$0xff] }
 0xa69   :  { %3436 = vmatprep.subr.bf16.mxu1 %v3864_v0 }
 0xa6c   :  { %3438 = vmatpush3.bf16.msra.mxu1 %v3437_v25  ;;  %v1703_v25 = vld [vmem:[#allocation11 + $0x358] sm:$0xff] }
 0xa6d   :  { %3439 = vmatprep.subr.bf16.mxu1 %v3864_v0 }
 0xb2e   :  { %v1376_v2 = vpop.f32.mrb[10].mxu1 }
 0xb2f   :  { %v1377_v3 = vadd.f32 %v1376_v2, %v1303_v62  ;;  %v1378_v4 = vpop.f32.mrb[11].mxu1  ;;  %v1607_v62 = vld [vmem:[#allocation10 + $0x3e8] sm:$0xff]  ;;  %v1608_v2 = vld [vmem:[#allocation10 + $0x3f0] sm:$0xff] }
 0xb30   :  { %v1379_v13 = vadd.f32 %v1378_v4, %v1307_v10 }
 0xb31   :  { %v1385_v6 = vmul.f32 %v1384_v63, %v1377_v3  ;;  %v1609_v3 = vld [vmem:[#allocation10 + $0x3f8] sm:$0xff] }
 0xb32   :  { %v1386_v17 = vmul.f32 %v1384_v63, %v1379_v13  ;;  %v3467_v63 = vpack.c.bf16 %v1607_v62, %v1606_v61  ;;  %v3470_v4 = vpack.c.bf16 %v1609_v3, %v1608_v2  ;;  %v1694_v13 = vld [vmem:[#allocation11 + $0x310] sm:$0xff]  ;;  %v1721_v62 = vld [vmem:[#allocation11 + $0x3e8] sm:$0xff] }
 0xb33   :  { %v1387_v7 = vmul.f32 1.442695, %v1385_v6  ;;  %v4229_v8 = vadd.f32 %v1385_v6, %v964_v5  ;;  %v1693_v5 = vld [vmem:[#allocation11 + $0x308] sm:$0xff]  ;;  %v1695_v6 = vld [vmem:[#allocation11 + $0x318] sm:$0xff]  ;;  %v1718_v61 = vld [vmem:[#allocation11 + $0x3d0] sm:$0xff] }
 0xb34   :  { %v3472_v10 = vpack.c.bf16 %v1695_v6, %v1693_v5  ;;  %v3498_v2 = vpack.c.bf16 %v1718_v61, %v1716_v59  ;;  %v1722_v5 = vld [vmem:[#allocation11 + $0x3f0] sm:$0xff]  ;;  %v1811_v61 = vrot.slane %v4098_v12, %v1394_v14 }
 0xb35   :  { %3646 = vpow2.f32 %v1387_v7  ;;  %v1692_v7 = vld [vmem:[#allocation11 + $0x300] sm:$0xff]  ;;  %v2301_v59 = vld [vmem:[%s4370_s7 + $0x6] sm:$0x3] }
 0xb3f   :  { %v3647_v16 = vpop.eup %3646 }
 0xb40   :  { %v1389_v15 = vmul.f32 %v3647_v16, %v4174_v22  ;;  %v1506_v22 = vld [vmem:[#allocation10 + $0x350] sm:$0xff]  ;;  %v1697_v16 = vld [vmem:[#allocation11 + $0x328] sm:$0xff] }
 0xb41   :  { %v3440_v28 = vpack.c.bf16 %v1507_v26, %v1506_v22  ;;  %v3480_v26 = vpack.c.bf16 %v1703_v25, %v1701_v24 }
 0xb42   :  { %v4239_v9 = vadd.f32 %v1389_v15, %v1386_v17  ;;  %v1699_v17 = vld [vmem:[#allocation11 + $0x338] sm:$0xff]  ;;  %v3474_v15 = vpack.c.bf16 %v1694_v13, %v1692_v7  ;;  %v1827_v13 = vld [vmem:[#allocation7 + $0x210] sm:$0xff] }
 0xb43   :  { %3441 = vmatpush3.bf16.msra.mxu1 %v3440_v28  ;;  %v1700_v28 = vld [vmem:[#allocation11 + $0x340] sm:$0xff] }
 0xb44   :  { %v1396_v21 = vmul.f32 %v1395_v18, %v4239_v9  ;;  %3442 = vmatprep.subr.bf16.mxu1 %v3864_v0  ;;  %v3476_v18 = vpack.c.bf16 %v1699_v17, %v1697_v16  ;;  %v3482_v31 = vpack.c.bf16 %v1702_v27, %v1700_v28  ;;  %v1825_v7 = vld [vmem:[#allocation7 + $0x200] sm:$0xff]  ;;  %v1828_v17 = vld [vmem:[#allocation7 + $0x218] sm:$0xff]  ;;  %v1830_v27 = vld [vmem:[#allocation7 + $0x228] sm:$0xff] }
 0xb45   :  { %v1829_v28 = vld [vmem:[#allocation7 + $0x220] sm:$0xff] }
 0xb46   :  { %2911 = vmatmul.mubr.f32.vlgmr.msra.gmra.mrb[12].mxu0 %v1396_v21  ;;  %v1696_v21 = vld [vmem:[#allocation11 + $0x320] sm:$0xff] }
 0xb47   :  { %2980 = vmatprep.mubr.msk.f32.mxu0 %vm3865_vm0, %v3866_v1  ;;  %3444 = vmatpush3.bf16.msra.mxu1 %v3443_v30  ;;  %v3478_v22 = vpack.c.bf16 %v1698_v23, %v1696_v21  ;;  %v1707_v30 = vld [vmem:[#allocation11 + $0x378] sm:$0xff] }
 0xb48   :  { %3445 = vmatprep.subr.bf16.mxu1 %v3864_v0  ;;  %3450 = vmatpush3.bf16.msra.mxu0 %v3449_v37  ;;  %v3484_v38 = vpack.c.bf16 %v1707_v30, %v1705_v29  ;;  %v3511_v29 = vpack.c.bf16 %v1830_v27, %v1829_v28  ;;  %v1831_v30 = vld [vmem:[#allocation7 + $0x230] sm:$0xff]  ;;  %v1938_v27 = vld [vmem:[#allocation10 + $0x478] sm:$0xff] }
 0xb49   :  { %3451 = vmatprep.subr.bf16.mxu0 %v3864_v0  ;;  %v1937_v28 = vld [vmem:[#allocation10 + $0x470] sm:$0xff] }
 0xb4b   :  { %3447 = vmatpush3.bf16.msra.mxu1 %v3446_v33  ;;  %v1704_v33 = vld [vmem:[#allocation11 + $0x360] sm:$0xff] }
 0xb4c   :  { %3453 = vmatpush3.bf16.msra.mxu0 %v3452_v40  ;;  %3473 = vmatprep.subr.bf16.mxu1 %v3472_v10  ;;  %v3486_v37 = vpack.c.bf16 %v1706_v34, %v1704_v33  ;;  %v2298_v40 = vld [vmem:[%s4368_s5 + $0x6] ss:$0 sm:$0xff]  ;;  %v1826_v10 = vld [vmem:[#allocation7 + $0x208] sm:$0xff]  ;;  %v1833_v33 = vld [vmem:[#allocation7 + $0x240] sm:$0xff] }
 0xb4d   :  { %3454 = vmatprep.subr.bf16.mxu0 %v3864_v0  ;;  %v3505_v16 = vpack.c.bf16 %v1826_v10, %v1825_v7  ;;  %v1834_v34 = vld [vmem:[#allocation7 + $0x248] sm:$0xff]  ;;  %v1821_v10 = vsub.s32 4, %v4029_v32 }
 0xb4e   :  { %v3517_v43 = vpack.c.bf16 %v1834_v34, %v1833_v33  ;;  %v2024_v34 = vld [vmem:[#allocation10 + $0x498] sm:$0xff] }
 0xb4f   :  { %v1822_v14 = vrot.slane %v4234_v19, %v1821_v10 }
 0xb50   :  { %3456 = vmatpush3.bf16.msra.mxu0 %v3455_v44 }
 0xb51   :  { %3457 = vmatprep.subr.bf16.mxu0 %v3864_v0 }
 0xb54   :  { %3459 = vmatpush3.bf16.msra.mxu0 %v3458_v47 }
 0xb55   :  { %3460 = vmatprep.subr.bf16.mxu0 %v3864_v0 }
 0xb58   :  { %3462 = vmatpush3.bf16.msra.mxu0 %v3461_v57  ;;  %v1717_v57 = vld [vmem:[#allocation11 + $0x3c8] sm:$0xff] }
 0xb59   :  { %3463 = vmatprep.subr.bf16.mxu0 %v3864_v0 }
 0xb5c   :  { %3465 = vmatpush3.bf16.msra.mxu0 %v3464_v60  ;;  %v3496_v60 = vpack.c.bf16 %v1719_v58, %v1717_v57  ;;  %v1930_v57 = vld [vmem:[#allocation10 + $0x438] sm:$0xff] }
 0xb5d   :  { %3466 = vmatprep.subr.bf16.mxu0 %v3864_v0 }
 0xb60   :  { %3468 = vmatpush3.bf16.msra.mxu0 %v3467_v63  ;;  %v1723_v63 = vld [vmem:[#allocation11 + $0x3f8] sm:$0xff] }
 0xb61   :  { %3469 = vmatprep.subr.bf16.mxu0 %v3864_v0  ;;  %v3500_v3 = vpack.c.bf16 %v1723_v63, %v1721_v62 }
 0xb64   :  { %3471 = vmatpush3.bf16.msra.mxu0 %v3470_v4  ;;  %v1720_v4 = vld [vmem:[#allocation11 + $0x3e0] sm:$0xff] }
 0xb65   :  { %3504 = vmatprep.subr.bf16.mxu0 %v3864_v0  ;;  %v3502_v6 = vpack.c.bf16 %v1722_v5, %v1720_v4 }
 0xc19   :  { %v1488_v49 = vpop.f32.mrb[12].mxu0 }
 0xc1a   :  { %v1489_v50 = vadd.f32 %v2296_v48, %v1488_v49  ;;  %v2912_v51 = vpop.f32.mrb[13].mxu0  ;;  %v1708_v48 = vld [vmem:[#allocation11 + $0x380] sm:$0xff]  ;;  %v1710_v49 = vld [vmem:[#allocation11 + $0x390] sm:$0xff] }
 0xc1b   :  { %v1713_v51 = vld [vmem:[#allocation11 + $0x3a8] sm:$0xff] }
 0xc1c   :  { %3648 = vtanh.f32 %v1489_v50  ;;  %v1493_v52 = vmax.f32 %v1489_v50, 0.0  ;;  %v3490_v50 = vpack.c.bf16 %v1710_v49, %v1708_v48  ;;  %v1924_v48 = vld [vmem:[#allocation10 + $0x408] sm:$0xff]  ;;  %v1925_v49 = vld [vmem:[#allocation10 + $0x410] sm:$0xff] }
 0xc26   :  { %v3649_v53 = vpop.eup %3648 }
 0xc27   :  { %v1494_v54 = vsel %vm115_vm1, %v3649_v53, %v1493_v52  ;;  %v1715_v52 = vld [vmem:[#allocation11 + $0x3b8] sm:$0xff] }
 0xc28   :  { %2946 = vmatmul.mubr.f32.vlgmr.msra.gmra.mrb[12].mxu1 %v1494_v54  ;;  %v3492_v53 = vpack.c.bf16 %v1715_v52, %v1713_v51  ;;  %v1712_v54 = vld [vmem:[#allocation11 + $0x3a0] sm:$0xff]  ;;  %v1926_v51 = vld [vmem:[#allocation10 + $0x418] sm:$0xff] }
 0xc29   :  { %1801 = vmatprep.mubr.f32.mxu1 %v3866_v1  ;;  %3475 = vmatpush1.bf16.msra.mxu1 %v3474_v15  ;;  %v3494_v56 = vpack.c.bf16 %v1714_v55, %v1712_v54  ;;  %v3508_v15 = vpack.c.bf16 %v1828_v17, %v1827_v13  ;;  %v3532_v52 = vpack.c.bf16 %v1926_v51, %v1925_v49  ;;  %v1928_v54 = vld [vmem:[#allocation10 + $0x428] sm:$0xff]  ;;  %v2029_v51 = vld [vmem:[#allocation10 + $0x4c0] sm:$0xff] }
 0xc2a   :  { %3477 = vmatprep.subr.bf16.mxu1 %v3476_v18  ;;  %v2300_v18 = vld [vmem:[%s4368_s5 + $0x7] ss:$0 sm:$0xff] }
 0xc2d   :  { %3479 = vmatpush1.bf16.msra.mxu1 %v3478_v22 }
 0xc2e   :  { %3481 = vmatprep.subr.bf16.mxu1 %v3480_v26 }
 0xc31   :  { %3483 = vmatpush1.bf16.msra.mxu1 %v3482_v31  ;;  %v1832_v31 = vld [vmem:[#allocation7 + $0x238] sm:$0xff] }
 0xc32   :  { %3485 = vmatprep.subr.bf16.mxu1 %v3484_v38  ;;  %v3514_v38 = vpack.c.bf16 %v1832_v31, %v1831_v30  ;;  %v2021_v30 = vld [vmem:[#allocation10 + $0x480] sm:$0xff]  ;;  %v2022_v31 = vld [vmem:[#allocation10 + $0x488] sm:$0xff] }
 0xc33   :  { %v3553_v33 = vpack.c.bf16 %v2022_v31, %v2021_v30 }
 0xc35   :  { %3487 = vmatpush1.bf16.msra.mxu1 %v3486_v37  ;;  %v1836_v37 = vld [vmem:[#allocation7 + $0x258] sm:$0xff] }
 0xc36   :  { %3489 = vmatprep.subr.bf16.mxu1 %v3488_v39  ;;  %v3520_v39 = vpack.c.bf16 %v1836_v37, %v1835_v35  ;;  %v2025_v35 = vld [vmem:[#allocation10 + $0x4a0] sm:$0xff]  ;;  %v2026_v37 = vld [vmem:[#allocation10 + $0x4a8] sm:$0xff] }
 0xc39   :  { %3491 = vmatpush1.bf16.msra.mxu1 %v3490_v50 }
 0xc3a   :  { %3493 = vmatprep.subr.bf16.mxu1 %v3492_v53  ;;  %v1927_v53 = vld [vmem:[#allocation10 + $0x420] sm:$0xff] }
 0xc3b   :  { %v3535_v55 = vpack.c.bf16 %v1928_v54, %v1927_v53  ;;  %v2031_v54 = vld [vmem:[#allocation10 + $0x4d0] sm:$0xff] }
 0xc3d   :  { %3495 = vmatpush1.bf16.msra.mxu1 %v3494_v56  ;;  %v1929_v56 = vld [vmem:[#allocation10 + $0x430] sm:$0xff] }
 0xc3e   :  { %3497 = vmatprep.subr.bf16.mxu1 %v3496_v60  ;;  %v3538_v58 = vpack.c.bf16 %v1930_v57, %v1929_v56  ;;  %v1730_v60 = vrot.slane %v2301_v59, %v4034_v36  ;;  %v2033_v57 = vld [vmem:[#allocation10 + $0x4e0] sm:$0xff] }
 0xc41   :  { %3499 = vmatpush1.bf16.msra.mxu1 %v3498_v2 }
 0xc42   :  { %3501 = vmatprep.subr.bf16.mxu1 %v3500_v3 }
 0xc45   :  { %3503 = vmatpush1.bf16.msra.mxu1 %v3502_v6  ;;  %v1734_v6 = vrot.slane %v2301_v59, %v4107_v20 }
 0xc46   :  { %3528 = vmatprep.subr.bf16.mxu1 %v3864_v0 }
 0xcfb   :  { %v1586_v41 = vpop.f32.mrb[12].mxu1 }
 0xcfc   :  { %v1587_v42 = vadd.f32 %v2298_v40, %v1586_v41  ;;  %v2947_v44 = vpop.f32.mrb[13].mxu1  ;;  %v1837_v40 = vld [vmem:[#allocation7 + $0x260] sm:$0xff]  ;;  %v1838_v41 = vld [vmem:[#allocation7 + $0x268] sm:$0xff] }
 0xcfd   :  { %v1839_v44 = vld [vmem:[#allocation7 + $0x270] sm:$0xff] }
 0xcfe   :  { %3650 = vtanh.f32 %v1587_v42  ;;  %v1591_v45 = vmax.f32 %v1587_v42, 0.0  ;;  %v3523_v42 = vpack.c.bf16 %v1838_v41, %v1837_v40  ;;  %v2027_v40 = vld [vmem:[#allocation10 + $0x4b0] sm:$0xff]  ;;  %v2028_v41 = vld [vmem:[#allocation10 + $0x4b8] sm:$0xff] }
 0xd08   :  { %v3651_v46 = vpop.eup %3650 }
 0xd09   :  { %v1592_v47 = vsel %vm115_vm1, %v3651_v46, %v1591_v45  ;;  %v1840_v45 = vld [vmem:[#allocation7 + $0x278] sm:$0xff] }
 0xd0a   :  { %2981 = vmatmul.mubr.f32.vlgmr.msra.gmra.mrb[14].mxu0 %v1592_v47  ;;  %v3526_v46 = vpack.c.bf16 %v1840_v45, %v1839_v44  ;;  %v1923_v47 = vld [vmem:[#allocation10 + $0x400] sm:$0xff]  ;;  %v2302_v44 = vld [vmem:[#allocation8 + $0x4] ss:$0 sm:$0xff] }
 0xd0b   :  { %3015 = vmatprep.mubr.msk.f32.mxu0 %vm3865_vm0, %v3866_v1  ;;  %3506 = vmatpush3.bf16.msra.mxu0 %v3505_v16  ;;  %v3529_v50 = vpack.c.bf16 %v1924_v48, %v1923_v47 }
 0xd0c   :  { %3507 = vmatprep.subr.bf16.mxu0 %v3864_v0 }
 0xd0f   :  { %3509 = vmatpush3.bf16.msra.mxu0 %v3508_v15 }
 0xd10   :  { %3510 = vmatprep.subr.bf16.mxu0 %v3864_v0 }
 0xd13   :  { %3512 = vmatpush3.bf16.msra.mxu0 %v3511_v29  ;;  %v3550_v29 = vpack.c.bf16 %v1938_v27, %v1937_v28  ;;  %v2133_v28 = vld [vmem:[#allocation11 + $0x470] sm:$0xff]  ;;  %v2136_v27 = vld [vmem:[#allocation11 + $0x488] sm:$0xff] }
 0xd14   :  { %3513 = vmatprep.subr.bf16.mxu0 %v3864_v0 }
 0xd17   :  { %3515 = vmatpush3.bf16.msra.mxu0 %v3514_v38  ;;  %v2023_v38 = vld [vmem:[#allocation10 + $0x490] sm:$0xff] }
 0xd18   :  { %3516 = vmatprep.subr.bf16.mxu0 %v3864_v0 }
 0xd1b   :  { %3518 = vmatpush3.bf16.msra.mxu0 %v3517_v43  ;;  %v3556_v43 = vpack.c.bf16 %v2024_v34, %v2023_v38  ;;  %v2304_v38 = vld [vmem:[%s4368_s5 + $0x8] ss:$0 sm:$0xff] }
 0xd1c   :  { %3519 = vmatprep.subr.bf16.mxu0 %v3864_v0 }
 0xd1f   :  { %3521 = vmatpush3.bf16.msra.mxu0 %v3520_v39  ;;  %v3559_v39 = vpack.c.bf16 %v2026_v37, %v2025_v35 }
 0xd20   :  { %3522 = vmatprep.subr.bf16.mxu0 %v3864_v0 }
 0xd23   :  { %3524 = vmatpush3.bf16.msra.mxu0 %v3523_v42  ;;  %v3562_v42 = vpack.c.bf16 %v2028_v41, %v2027_v40  ;;  %v2135_v40 = vld [vmem:[#allocation11 + $0x480] sm:$0xff]  ;;  %v2137_v41 = vld [vmem:[#allocation11 + $0x490] sm:$0xff] }
 0xd24   :  { %3525 = vmatprep.subr.bf16.mxu0 %v3864_v0 }
 0xd27   :  { %3527 = vmatpush3.bf16.msra.mxu0 %v3526_v46 }
 0xd28   :  { %3552 = vmatprep.subr.bf16.mxu0 %v3864_v0 }
 0xddd   :  { %v1684_v21 = vpop.f32.mrb[14].mxu0 }
 0xdde   :  { %v1685_v23 = vadd.f32 %v2300_v18, %v1684_v21  ;;  %v2982_v24 = vpop.f32.mrb[15].mxu0  ;;  %v1932_v21 = vld [vmem:[#allocation10 + $0x448] sm:$0xff] }
 0xddf   :  { %v1933_v24 = vld [vmem:[#allocation10 + $0x450] sm:$0xff] }
 0xde0   :  { %3652 = vtanh.f32 %v1685_v23  ;;  %v1689_v25 = vmax.f32 %v1685_v23, 0.0 }
 0xdea   :  { %v3653_v22 = vpop.eup %3652 }
 0xdeb   :  { %v1690_v26 = vsel %vm115_vm1, %v3653_v22, %v1689_v25  ;;  %v1935_v22 = vld [vmem:[#allocation10 + $0x460] sm:$0xff] }
 0xdec   :  { %1802 = vmatmul.mubr.f32.vlgmr.msra.gmra.mrb[14].mxu1 %v1690_v26  ;;  %v1936_v26 = vld [vmem:[#allocation10 + $0x468] sm:$0xff] }
 0xded   :  { %3050 = vmatprep.mubr.msk.f32.mxu1 %vm3865_vm0, %v3866_v1  ;;  %3530 = vmatpush3.bf16.msra.mxu1 %v3529_v50  ;;  %v3547_v19 = vpack.c.bf16 %v1936_v26, %v1935_v22 }
 0xdee   :  { %3531 = vmatprep.subr.bf16.mxu1 %v3864_v0 }
 0xdf1   :  { %3533 = vmatpush3.bf16.msra.mxu1 %v3532_v52  ;;  %v2030_v52 = vld [vmem:[#allocation10 + $0x4c8] sm:$0xff] }
 0xdf2   :  { %3534 = vmatprep.subr.bf16.mxu1 %v3864_v0  ;;  %v3565_v53 = vpack.c.bf16 %v2030_v52, %v2029_v51  ;;  %v2146_v51 = vld [vmem:[#allocation11 + $0x4d8] sm:$0xff]  ;;  %v2143_v52 = vld [vmem:[#allocation11 + $0x4c0] sm:$0xff] }
 0xdf5   :  { %3536 = vmatpush3.bf16.msra.mxu1 %v3535_v55  ;;  %v2032_v55 = vld [vmem:[#allocation10 + $0x4d8] sm:$0xff] }
 0xdf6   :  { %3537 = vmatprep.subr.bf16.mxu1 %v3864_v0  ;;  %v3568_v56 = vpack.c.bf16 %v2032_v55, %v2031_v54  ;;  %v2145_v54 = vld [vmem:[#allocation11 + $0x4d0] sm:$0xff]  ;;  %v2148_v55 = vld [vmem:[#allocation11 + $0x4e8] sm:$0xff] }
 0xdf9   :  { %3539 = vmatpush3.bf16.msra.mxu1 %v3538_v58  ;;  %v2034_v58 = vld [vmem:[#allocation10 + $0x4e8] sm:$0xff] }
 0xdfa   :  { %3540 = vmatprep.subr.bf16.mxu1 %v3864_v0  ;;  %v3571_v59 = vpack.c.bf16 %v2034_v58, %v2033_v57  ;;  %v3602_v57 = vpack.c.bf16 %v2145_v54, %v2143_v52 }
 0xebf   :  { %v1803_v62 = vpop.f32.mrb[14].mxu1 }
 0xec0   :  { %v1804_v63 = vadd.f32 %v1803_v62, %v1730_v60  ;;  %v1805_v2 = vpop.f32.mrb[15].mxu1  ;;  %v2035_v60 = vld [vmem:[#allocation10 + $0x4f0] sm:$0xff] }
 0xec1   :  { %v1806_v7 = vadd.f32 %v1805_v2, %v1734_v6  ;;  %v2119_v2 = vld [vmem:[#allocation11 + $0x400] sm:$0xff]  ;;  %v2124_v6 = vld [vmem:[#allocation11 + $0x428] sm:$0xff] }
 0xec2   :  { %v1812_v3 = vmul.f32 %v1811_v61, %v1804_v63  ;;  %v2122_v63 = vld [vmem:[#allocation11 + $0x418] sm:$0xff] }
 0xec3   :  { %v1813_v16 = vmul.f32 %v1811_v61, %v1806_v7  ;;  %v2036_v61 = vld [vmem:[#allocation10 + $0x4f8] sm:$0xff] }
 0xec4   :  { %v1814_v4 = vmul.f32 1.442695, %v1812_v3  ;;  %v4293_v5 = vadd.f32 %v1812_v3, %v4229_v8  ;;  %v1931_v8 = vld [vmem:[#allocation10 + $0x440] sm:$0xff]  ;;  %v3574_v62 = vpack.c.bf16 %v2036_v61, %v2035_v60  ;;  %v2126_v7 = vld [vmem:[#allocation11 + $0x438] sm:$0xff]  ;;  %v2149_v60 = vld [vmem:[#allocation11 + $0x4f0] sm:$0xff] }
 0xec5   :  { %v3541_v23 = vpack.c.bf16 %v1932_v21, %v1931_v8  ;;  %v2130_v8 = vld [vmem:[#allocation11 + $0x458] sm:$0xff] }
 0xec6   :  { %3654 = vpow2.f32 %v1814_v4  ;;  %v2121_v4 = vld [vmem:[#allocation11 + $0x410] sm:$0xff] }
 0xec7   :  { %3542 = vmatpush3.bf16.msra.mxu1 %v3541_v23 }
 0xec8   :  { %3543 = vmatprep.subr.bf16.mxu1 %v3864_v0 }
 0xed0   :  { %v3655_v13 = vpop.eup %3654 }
 0xed1   :  { %v1816_v17 = vmul.f32 %v3655_v13, %v4239_v9  ;;  %v1934_v9 = vld [vmem:[#allocation10 + $0x458] sm:$0xff]  ;;  %v3578_v13 = vpack.c.bf16 %v2121_v4, %v2119_v2 }
 0xed2   :  { %v3544_v25 = vpack.c.bf16 %v1934_v9, %v1933_v24  ;;  %v2129_v24 = vld [vmem:[#allocation11 + $0x450] sm:$0xff]  ;;  %v2132_v9 = vld [vmem:[#allocation11 + $0x468] sm:$0xff] }
 0xed3   :  { %v4301_v15 = vadd.f32 %v1816_v17, %v1813_v16  ;;  %v3580_v16 = vpack.c.bf16 %v2126_v7, %v2124_v6  ;;  %v2123_v17 = vld [vmem:[#allocation11 + $0x420] sm:$0xff]  ;;  %v2307_v7 = vld [vmem:[%s4370_s7 + $0x8] sm:$0x3] }
 0xed4   :  { %3545 = vmatpush3.bf16.msra.mxu1 %v3544_v25  ;;  %v2134_v25 = vld [vmem:[#allocation11 + $0x478] sm:$0xff] }
 0xed5   :  { %v1823_v18 = vmul.f32 %v1822_v14, %v4301_v15  ;;  %3546 = vmatprep.subr.bf16.mxu1 %v3864_v0  ;;  %v2125_v14 = vld [vmem:[#allocation11 + $0x430] sm:$0xff]  ;;  %v3588_v26 = vpack.c.bf16 %v2134_v25, %v2132_v9 }
 0xed6   :  { %v3582_v21 = vpack.c.bf16 %v2125_v14, %v2123_v17 }
 0xed7   :  { %3016 = vmatmul.mubr.f32.vlgmr.msra.gmra.mrb[16].mxu0 %v1823_v18  ;;  %v2128_v18 = vld [vmem:[#allocation11 + $0x448] sm:$0xff] }
 0xed8   :  { %3085 = vmatprep.mubr.msk.f32.mxu0 %vm3865_vm0, %v3866_v1  ;;  %3548 = vmatpush3.bf16.msra.mxu1 %v3547_v19  ;;  %v3584_v23 = vpack.c.bf16 %v2130_v8, %v2128_v18  ;;  %v2131_v19 = vld [vmem:[#allocation11 + $0x460] sm:$0xff] }
 0xed9   :  { %3549 = vmatprep.subr.bf16.mxu1 %v3864_v0  ;;  %3554 = vmatpush3.bf16.msra.mxu0 %v3553_v33  ;;  %v3590_v30 = vpack.c.bf16 %v2133_v28, %v2131_v19 }
 0xeda   :  { %3555 = vmatprep.subr.bf16.mxu0 %v3864_v0 }
 0xedc   :  { %3551 = vmatpush3.bf16.msra.mxu1 %v3550_v29  ;;  %v2138_v29 = vld [vmem:[#allocation11 + $0x498] sm:$0xff] }
 0xedd   :  { %3557 = vmatpush3.bf16.msra.mxu0 %v3556_v43  ;;  %v3592_v31 = vpack.c.bf16 %v2138_v29, %v2136_v27 }
 0xede   :  { %3558 = vmatprep.subr.bf16.mxu0 %v3864_v0 }
 0xee1   :  { %3560 = vmatpush3.bf16.msra.mxu0 %v3559_v39 }
 0xee2   :  { %3561 = vmatprep.subr.bf16.mxu0 %v3864_v0 }
 0xee5   :  { %3563 = vmatpush3.bf16.msra.mxu0 %v3562_v42  ;;  %v3594_v42 = vpack.c.bf16 %v2137_v41, %v2135_v40 }
 0xee6   :  { %3564 = vmatprep.subr.bf16.mxu0 %v3864_v0 }
 0xee9   :  { %3566 = vmatpush3.bf16.msra.mxu0 %v3565_v53 }
 0xeea   :  { %3567 = vmatprep.subr.bf16.mxu0 %v3864_v0 }
 0xeed   :  { %3569 = vmatpush3.bf16.msra.mxu0 %v3568_v56  ;;  %v2150_v56 = vld [vmem:[#allocation11 + $0x4f8] sm:$0xff] }
 0xeee   :  { %3570 = vmatprep.subr.bf16.mxu0 %v3864_v0  ;;  %v3604_v58 = vpack.c.bf16 %v2150_v56, %v2148_v55 }
 0xef1   :  { %3572 = vmatpush3.bf16.msra.mxu0 %v3571_v59  ;;  %v2147_v59 = vld [vmem:[#allocation11 + $0x4e0] sm:$0xff] }
 0xef2   :  { %3573 = vmatprep.subr.bf16.mxu0 %v3864_v0  ;;  %v2127_v0 = vld [vmem:[#allocation11 + $0x440] sm:$0xff]  ;;  %v3606_v61 = vpack.c.bf16 %v2149_v60, %v2147_v59 }
 0xef3   :  { %v3586_v22 = vpack.c.bf16 %v2129_v24, %v2127_v0 }
 0xef5   :  { %3575 = vmatpush3.bf16.msra.mxu0 %v3574_v62  ;;  %v2306_v62 = vld [vmem:[%s4368_s5 + $0x9] ss:$0 sm:$0xff]  ;;  %s3867_s5 = smov [#allocation14]  }
 0xef6   :  { %s2264_s20 = sshll.u32 %s3867_s5, 4  ;;  %s2265_s20 = int_to_ptr.vmem [resolvable:$true] %s2264_s20 }
 0xef7   :  { %s3797_s21 = scalar_lea.vmem %s2265_s20, 128  ;;  %p3802_p7 = scmp.lt.s32.totalorder %s2265_s20, %s2265_s20 }
 0xef8   :  { %p3798_p6 = scmp.ne.s32.totalorder %s2265_s20, %s3797_s21  ;;  %p3803_p8 = scmp.lt.s32.totalorder %s3797_s21, %s3797_s21 }
 0xefa   :  { %p3804_p9 = por %p3803_p8, %p3802_p7 }
 0xefc   :  { %p3805_p10 = pnand %p3804_p9, %p3798_p6 }
 0xfaa   :  { %v1915_v45 = vpop.f32.mrb[16].mxu0 }
 0xfab   :  { %v1916_v46 = vadd.f32 %v2302_v44, %v1915_v45  ;;  %v3017_v47 = vpop.f32.mrb[17].mxu0  ;;  %v2140_v44 = vld [vmem:[#allocation11 + $0x4a8] sm:$0xff]  ;;  %v2142_v45 = vld [vmem:[#allocation11 + $0x4b8] sm:$0xff] }
 0xfac   :  { %v2139_v47 = vld [vmem:[#allocation11 + $0x4a0] sm:$0xff] }
 0xfad   :  { %3656 = vtanh.f32 %v1916_v46  ;;  %v1920_v48 = vmax.f32 %v1916_v46, 0.0  ;;  %v3596_v46 = vpack.c.bf16 %v2142_v45, %v2140_v44 }
 0xfb7   :  { %v3657_v49 = vpop.eup %3656 }
 0xfb8   :  { %v1921_v50 = vsel %vm115_vm1, %v3657_v49, %v1920_v48  ;;  %v2141_v48 = vld [vmem:[#allocation11 + $0x4b0] sm:$0xff] }
 0xfb9   :  { %3051 = vmatmul.mubr.f32.vlgmr.msra.gmra.mrb[16].mxu1 %v1921_v50  ;;  %v3598_v49 = vpack.c.bf16 %v2141_v48, %v2139_v47  ;;  %v2144_v50 = vld [vmem:[#allocation11 + $0x4c8] sm:$0xff] }
 0xfba   :  { %2228 = vmatprep.mubr.f32.mxu1 %v3866_v1  ;;  %v2120_v1 = vld [vmem:[#allocation11 + $0x408] sm:$0xff]  ;;  %v3600_v53 = vpack.c.bf16 %v2146_v51, %v2144_v50 }
 0xfbb   :  { %v3576_v3 = vpack.c.bf16 %v2122_v63, %v2120_v1 }
 0xfbd   :  { %3577 = vmatprep.subr.bf16.mxu1 %v3576_v3 }
 0xfbe   :  { %3579 = vmatpush1.bf16.msra.mxu1 %v3578_v13  ;;  %v2157_v13 = vrot.slane %v2307_v7, %v4034_v36 }
 0xfbf   :  { %3581 = vmatprep.subr.bf16.mxu1 %v3580_v16  ;;  %v2238_v16 = vrot.slane %v4098_v12, %v1821_v10 }
 0xfc2   :  { %3583 = vmatpush1.bf16.msra.mxu1 %v3582_v21 }
 0xfc3   :  { %3585 = vmatprep.subr.bf16.mxu1 %v3584_v23 }
 0xfc6   :  { %3587 = vmatpush1.bf16.msra.mxu1 %v3586_v22 }
 0xfc7   :  { %3589 = vmatprep.subr.bf16.mxu1 %v3588_v26 }
 0xfca   :  { %3591 = vmatpush1.bf16.msra.mxu1 %v3590_v30 }
 0xfcb   :  { %3593 = vmatprep.subr.bf16.mxu1 %v3592_v31 }
 0xfce   :  { %3595 = vmatpush1.bf16.msra.mxu1 %v3594_v42 }
 0xfcf   :  { %3597 = vmatprep.subr.bf16.mxu1 %v3596_v46 }
 0xfd2   :  { %3599 = vmatpush1.bf16.msra.mxu1 %v3598_v49 }
 0xfd3   :  { %3601 = vmatprep.subr.bf16.mxu1 %v3600_v53 }
 0xfd6   :  { %3603 = vmatpush1.bf16.msra.mxu1 %v3602_v57 }
 0xfd7   :  { %3605 = vmatprep.subr.bf16.mxu1 %v3604_v58 }
 0xfda   :  { %3607 = vmatpush1.bf16.msra.mxu1 %v3606_v61 }
0x108c   :  { %v2013_v33 = vpop.f32.mrb[16].mxu1 }
0x108d   :  { %v2014_v34 = vadd.f32 %v2304_v38, %v2013_v33  ;;  %v3052_v43 = vpop.f32.mrb[17].mxu1 }
0x108f   :  { %3658 = vtanh.f32 %v2014_v34  ;;  %v2018_v35 = vmax.f32 %v2014_v34, 0.0 }
0x1099   :  { %v3659_v37 = vpop.eup %3658 }
0x109a   :  { %v2019_v39 = vsel %vm115_vm1, %v3659_v37, %v2018_v35 }
0x109b   :  { %3086 = vmatmul.mubr.f32.vlgmr.msra.gmra.mrb[18].mxu0 %v2019_v39 }
0x116e   :  { %v2111_v1 = vpop.f32.mrb[18].mxu0 }
0x116f   :  { %v2112_v63 = vadd.f32 %v2306_v62, %v2111_v1  ;;  %v3087_v2 = vpop.f32.mrb[19].mxu0 }
0x1171   :  { %3660 = vtanh.f32 %v2112_v63  ;;  %v2116_v3 = vmax.f32 %v2112_v63, 0.0 }
0x117b   :  { %v3661_v4 = vpop.eup %3660 }
0x117c   :  { %v2117_v6 = vsel %vm115_vm1, %v3661_v4, %v2116_v3 }
0x117d   :  { %2229 = vmatmul.mubr.f32.vlgmr.msra.gmra.mrb[18].mxu1 %v2117_v6 }
0x1250   :  { %v2230_v17 = vpop.f32.mrb[18].mxu1 }
0x1251   :  { %v2231_v14 = vadd.f32 %v2230_v17, %v2157_v13  ;;  %v2232_v18 = vpop.f32.mrb[19].mxu1 }
0x1253   :  { %v2239_v8 = vmul.f32 %v2238_v16, %v2231_v14 }
0x1255   :  { %v2241_v21 = vmul.f32 1.442695, %v2239_v8  ;;  %v2245_v11 = vadd.f32 %v2239_v8, %v4293_v5 }
0x1257   :  { %3662 = vpow2.f32 %v2241_v21  ;;  %2247 = vst [vmem:[#allocation14] sm:$0xff] %v2245_v11 }
0x1258   :  { %3808 = shalt.err (!%p3805_p10)
}
0x1259   :  { %s3809_s23 = scalar_lea.hbm %s4372_s9, 128 }
0x125a   :  { %p3810_p11 = scmp.ne.s32.totalorder %s4372_s9, %s3809_s23  ;;  %p3813_p12 = scmp.lt.u32.totalorder %s3809_s23, %s4372_s9 }
0x125c   :  { %p3815_p13 = pnand %p3813_p12, %p3810_p11 }
0x125e   :  { %3818 = shalt.err (!%p3815_p13)
}
0x125f   :  { %2267 = dma.vmem_to_hbm [thread:$0]  %s2265_s20, 128, %s4372_s9, [#allocation15]   ;;  %v2161_v32 = vrot.slane %v2307_v7, %v4107_v20 }
0x1260   :  { %s3868_s2 = smov [#allocation13]  }
0x1261   :  { %v2233_v36 = vadd.f32 %v2232_v18, %v2161_v32  ;;  %v3663_v12 = vpop.eup %3662  ;;  %s2254_s18 = sshll.u32 %s3868_s2, 4  ;;  %s2255_s18 = int_to_ptr.vmem [resolvable:$true] %s2254_s18 }
0x1262   :  { %v2243_v10 = vmul.f32 %v3663_v12, %v4301_v15  ;;  %s3819_s28 = scalar_lea.vmem %s2255_s18, 128  ;;  %p3824_p1 = scmp.lt.s32.totalorder %s2255_s18, %s2255_s18 }
0x1263   :  { %v2240_v5 = vmul.f32 %v2238_v16, %v2233_v36  ;;  %p3820_p0 = scmp.ne.s32.totalorder %s2255_s18, %s3819_s28  ;;  %p3825_p2 = scmp.lt.s32.totalorder %s3819_s28, %s3819_s28 }
0x1265   :  { %v2244_v23 = vadd.f32 %v2243_v10, %v2240_v5  ;;  %p3826_p3 = por %p3825_p2, %p3824_p1 }
0x1267   :  { %2246 = vst [vmem:[#allocation13] sm:$0xff] %v2244_v23  ;;  %p3827_p4 = pnand %p3826_p3, %p3820_p0 }
0x1269   :  { %3830 = shalt.err (!%p3827_p4)
}
0x126a   :  { %s3831_s30 = scalar_lea.hbm %s4371_s8, 128 }
0x126b   :  { %p3832_p5 = scmp.ne.s32.totalorder %s4371_s8, %s3831_s30  ;;  %p3835_p6 = scmp.lt.u32.totalorder %s3831_s30, %s4371_s8 }
0x126d   :  { %p3837_p7 = pnand %p3835_p6, %p3832_p5 }
0x126f   :  { %3840 = shalt.err (!%p3837_p7)
}
0x1270   :  { %2257 = dma.vmem_to_hbm [thread:$0]  %s2255_s18, 128, %s4371_s8, [#allocation4]  }
0x1271   :  { %3849 = dma.done.wait [#allocation4], 128  }
0x1272   :  { %3850 = vsyncadd [#allocation4], 4294967168 }
0x1273   :  { %3851 = dma.done.wait [#allocation15], 128  }
0x1274   :  { %3852 = vsyncadd [#allocation15], 4294967168 }
0x1275   :  { %2274 = vsyncpa [#allocation3], 1 }
0x1276   :  { %2275 = vsyncpa [#allocation6], 1 }
0x1277   :  { %2276 = vsyncpa [#allocation9], 1 }
0x1278   :  { %2277 = vsyncpa [#allocation12], 1 }
0x1279   :  { %2278 = vsyncpa [#allocation4], 1 }
0x127a   :  { %2279 = vsyncpa [#allocation15], 1 }

</bundles_post_ra>
